<compile_context>
chip_gen: v6e
topology: v6e:2x2x1
jax: 0.10.0
libtpu: 0.0.40
codegen_flags: <defaults>
</compile_context>

<pallas_src>
import jax
import jax.numpy as jnp
from jax.experimental import pallas as pl
from jax.experimental.pallas import tpu as pltpu


# ------------------------------ fused Pallas kernel ------------------------------

def _fct_kernel(x_ref, wa_ref, wb_ref, bb_ref, up_ref, o_ref, h2s_ref):
    # x_ref  : (B, IC*IH*IW)      f32   flat input (natural NCHW flattening)
    # wa_ref : (IC*IH*IW, C*IH)   bf16  row-remap + channel_fix + view + BN1 scale
    # wb_ref : (C*IH, SC*IH*RE)   bf16  conv3x3(pad=1) + BN2 scale folded
    # bb_ref : (1, SC*IH*RE)      f32   conv bias * BN2 scale + BN2 shift
    # up_ref : (IH*RE, SH*SW)     bf16  Kronecker bilinear upsample matrix
    # o_ref  : (B*SC, SH*SW)      f32   output, rows ordered (b, c) -> free NCHW view
    # h2s_ref: (B, SC, IH*RE)     f32   VMEM retile scratch
    b = x_ref.shape[0]
    n_chan = h2s_ref.shape[1]
    hw = h2s_ref.shape[2]

    # stage A: per-row grouped FC + channel_fix 1x1 + torch .view + BN1 scale, ReLU
    h1 = jnp.dot(x_ref[...].astype(jnp.bfloat16), wa_ref[...],
                 preferred_element_type=jnp.float32)
    h1 = jnp.maximum(h1, 0.0)                                     # (B, C*IH) f32

    # stage B: 3x3 conv (padding=1) as one dense contraction + bias + BN2, ReLU
    h2 = jnp.dot(h1.astype(jnp.bfloat16), wb_ref[...],
                 preferred_element_type=jnp.float32)
    h2 = jnp.maximum(h2 + bb_ref[...], 0.0)                       # (B, SC*HW) f32

    # retile (B, SC*HW) -> (B*SC, HW) through a tiny VMEM scratch (cheap vst/vld),
    # so stage C is ONE matmul instead of SC re-stagings of the same MXU RHS.
    for co in range(n_chan):                                      # static, unrolled
        h2s_ref[:, co, :] = h2[:, co * hw:(co + 1) * hw]
    lhs = h2s_ref[...].reshape(b * n_chan, hw).astype(jnp.bfloat16)

    # stage C: bilinear upsample (align_corners=True), all channels in one dot
    o_ref[...] = jnp.dot(lhs, up_ref[...], preferred_element_type=jnp.float32)


# ------------------------------ parameter construction ------------------------------

def _interp_matrix(out_size, in_size):
    """Bilinear (align_corners=True) 1-D interpolation matrix, shape (out, in)."""
    if out_size == 1:
        src = jnp.zeros((1,), jnp.float32)
    else:
        src = jnp.arange(out_size, dtype=jnp.float32) * (in_size - 1) / (out_size - 1)
    lo = jnp.clip(jnp.floor(src).astype(jnp.int32), 0, in_size - 1)
    hi = jnp.clip(lo + 1, 0, in_size - 1)
    w = src - lo.astype(jnp.float32)
    m = jnp.zeros((out_size, in_size), jnp.float32)
    m = m.at[jnp.arange(out_size), lo].add(1.0 - w)
    m = m.at[jnp.arange(out_size), hi].add(w)
    return m


def init_params(key, ic, ih, iw, sc, sh, sw):
    re = int(sw * iw / sh)          # re_row
    C = ic * re
    k1, k2, k3, k4 = jax.random.split(key, 4)

    # --- torch-equivalent raw weights (kaiming_normal_ fan_out, relu) ---
    # row_conv[i]: Conv2d(ic, ic*re, (1, iw), groups=ic, bias=False); weight (ic*re,1,1,iw)
    std_row = (2.0 / (C * iw)) ** 0.5
    w_row = std_row * jax.random.normal(k1, (ih, C, iw), jnp.float32)     # [i, o, w]
    # channel_fix: Conv2d(C, C, 1, bias=False)
    std_fix = (2.0 / C) ** 0.5
    w_fix = std_fix * jax.random.normal(k2, (C, C), jnp.float32)          # [o_out, o_in]
    # conv3x3: Conv2d(ic, sc, 3, padding=1) with bias (default torch bias init)
    std_c3 = (2.0 / (sc * 9)) ** 0.5
    w3 = std_c3 * jax.random.normal(k3, (sc, ic, 3, 3), jnp.float32)
    bound = 1.0 / (ic * 9) ** 0.5
    b3 = jax.random.uniform(k4, (sc,), jnp.float32, -bound, bound)

    # BatchNorm (eval): gamma=1, beta=0, running mean=0, var=1, eps=1e-5
    eps = 1e-5
    s1 = jnp.full((ic,), 1.0 / (1.0 + eps) ** 0.5, jnp.float32)
    s2 = jnp.full((sc,), 1.0 / (1.0 + eps) ** 0.5, jnp.float32)
    t2 = jnp.zeros((sc,), jnp.float32)

    # --- stage A matrix: x flat (g,i,w) -> feature flat (o,i) -> channel_fix -> BN1 ---
    # M1: per-row grouped FC as a block-sparse (dense-stored) matrix.
    #     feature[b, o, i] = sum_w w_row[i, o, w] * x[b, o//re, i, w]
    M1 = jnp.zeros((ic * ih * iw, C * ih), jnp.float32)
    for i in range(ih):
        for g in range(ic):
            blk = w_row[i, g * re:(g + 1) * re, :]            # (re, iw)  [r, w]
            rows = g * ih * iw + i * iw + jnp.arange(iw)      # input flat (g, i, w)
            cols = (g * re + jnp.arange(re)) * ih + i         # output flat (o=g*re+r, i)
            M1 = M1.at[rows[:, None], cols[None, :]].set(blk.T)
    # M2: channel_fix acting on flat (o, i):  kron(w_fix^T, I_ih)
    M2 = jnp.kron(w_fix.T, jnp.eye(ih, dtype=jnp.float32))    # (C*ih, C*ih)
    # torch `feature.view(b, ic, ih, re)` is a pure buffer reinterpretation: the flat
    # (o, i) index of feature2 IS the NCHW-flat (c2, h2, r2) index of feat_view.
    ch1 = jnp.repeat(s1, ih * re)                             # BN1 scale per flat position
    W_A = (M1 @ M2) * ch1[None, :]
    # BN1 shift is identically zero here (beta=0, mean=0) -> no bias input needed.

    # --- stage B matrix: conv3x3 (padding=1, zero pad) + bias + BN2 ---
    # input flat (c2, h2, r2) [C*ih], output flat (co, ho, wo) [sc*ih*re]
    W_B = jnp.zeros((ic * ih * re, sc * ih * re), jnp.float32)
    for kh in range(3):
        Sh = jnp.eye(ih, ih, k=1 - kh, dtype=jnp.float32)      # h2 = ho + kh - 1
        for kw in range(3):
            Sw = jnp.eye(re, re, k=1 - kw, dtype=jnp.float32)  # r2 = wo + kw - 1
            W_B = W_B + jnp.kron(jnp.kron(w3[:, :, kh, kw].T, Sh), Sw)
    ch2 = jnp.repeat(s2, ih * re)
    W_B = W_B * ch2[None, :]
    b_B = jnp.repeat(s2 * b3 + t2, ih * re).reshape(1, -1)

    # --- stage C matrix: separable bilinear upsample as one Kronecker matmul ---
    Uh = _interp_matrix(sh, ih)                               # (sh, ih)
    Uw = _interp_matrix(sw, re)                               # (sw, re)
    M_up = jnp.kron(Uh, Uw).T                                 # (ih*re, sh*sw)

    # bf16 weights -> halves HBM weight traffic; activations accumulate in f32.
    return dict(W_A=W_A.astype(jnp.bfloat16),
                W_B=W_B.astype(jnp.bfloat16),
                b_B=b_B,                                       # f32 (tiny)
                M_up=M_up.astype(jnp.bfloat16),
                sc=sc, sh=sh, sw=sw)


# ------------------------------ forward wrapper ------------------------------

def fc_transform_forward(x, params):
    B = x.shape[0]
    SC, SH, SW = params['sc'], params['sh'], params['sw']
    W_A, W_B, b_B, M_up = params['W_A'], params['W_B'], params['b_B'], params['M_up']
    HW = M_up.shape[0]                                        # IH*RE
    S_out = SH * SW
    xf = x.reshape(B, -1)                                     # free contiguous view

    flops = 2 * B * (W_A.shape[0] * W_A.shape[1]
                     + W_B.shape[0] * W_B.shape[1]
                     + SC * HW * S_out)
    bytes_accessed = (xf.size * 4 + W_A.size * 2 + W_B.size * 2
                      + b_B.size * 4 + M_up.size * 2 + B * SC * S_out * 4)

    vmem = pltpu.MemorySpace.VMEM
    out_flat = pl.pallas_call(
        _fct_kernel,
        out_shape=jax.ShapeDtypeStruct((B * SC, S_out), jnp.float32),
        in_specs=[pl.BlockSpec(memory_space=vmem)] * 5,
        out_specs=pl.BlockSpec(memory_space=vmem),
        scratch_shapes=[pltpu.VMEM((B, SC, HW), jnp.float32)],
        cost_estimate=pl.CostEstimate(flops=flops, transcendentals=0,
                                      bytes_accessed=bytes_accessed),
    )(xf, W_A, W_B, b_B, M_up)
    return out_flat.reshape(B, SC, SH, SW)                    # free contiguous view


# ---------------------------------- main -------------------------------------

if __name__ == "__main__":
    B = 2
    image_size = (4, 8, 16)           # (ic, ih, iw)
    space_featmap_size = (8, 16, 16)  # (sc, sh, sw)
    ic, ih, iw = image_size
    sc, sh, sw = space_featmap_size

    key = jax.random.PRNGKey(0)
    kx, kp = jax.random.split(key)
    x = jax.random.normal(kx, (B, ic, ih, iw), jnp.float32)
    params = init_params(kp, ic, ih, iw, sc, sh, sw)

    out = fc_transform_forward(x, params)
    out = jax.block_until_ready(out)
    assert out.shape == (B, sc, sh, sw), out.shape
    assert bool(jnp.all(jnp.isfinite(out)))
    print("KERNEL_OK")
</pallas_src>

<mosaic_0001>
module attributes {stable_mosaic.version = 11 : i64} {
  func.func @_fct_kernel(%arg0: memref<2x512xf32, #tpu.memory_space<vmem>>, %arg1: memref<512x512xbf16, #tpu.memory_space<vmem>>, %arg2: memref<512x1024xbf16, #tpu.memory_space<vmem>>, %arg3: memref<1x1024xf32, #tpu.memory_space<vmem>>, %arg4: memref<128x256xbf16, #tpu.memory_space<vmem>>, %arg5: memref<16x256xf32, #tpu.memory_space<vmem>>, %arg6: memref<2x8x128xf32, #tpu.memory_space<vmem>>) attributes {dimension_semantics = [], scalar_prefetch = 0 : i64, scratch_operands = 1 : i64, tpu.core_type = #tpu.core_type<tc>} {
    %c0 = arith.constant 0 : index
    %c0_0 = arith.constant 0 : index
    %0 = vector.load %arg0[%c0, %c0_0] : memref<2x512xf32, #tpu.memory_space<vmem>>, vector<2x512xf32>
    %1 = arith.truncf %0 : vector<2x512xf32> to vector<2x512xbf16>
    %c0_1 = arith.constant 0 : index
    %c0_2 = arith.constant 0 : index
    %2 = vector.load %arg1[%c0_1, %c0_2] : memref<512x512xbf16, #tpu.memory_space<vmem>>, vector<512x512xbf16>
    %cst = arith.constant dense<0.000000e+00> : vector<2x512xf32>
    %3 = tpu.matmul %1, %2, %cst {dimension_numbers = #tpu.dot_dimension_numbers<[1], [0], [0], [1], [0, 0, 1, 1], [], []>} : vector<2x512xbf16>, vector<512x512xbf16>, vector<2x512xf32> -> vector<2x512xf32>
    %cst_3 = arith.constant 0.000000e+00 : f32
    %4 = vector.broadcast %cst_3 : f32 to vector<2x512xf32>
    %5 = arith.maximumf %3, %4 : vector<2x512xf32>
    %6 = arith.truncf %5 : vector<2x512xf32> to vector<2x512xbf16>
    %c0_4 = arith.constant 0 : index
    %c0_5 = arith.constant 0 : index
    %7 = vector.load %arg2[%c0_4, %c0_5] : memref<512x1024xbf16, #tpu.memory_space<vmem>>, vector<512x1024xbf16>
    %cst_6 = arith.constant dense<0.000000e+00> : vector<2x1024xf32>
    %8 = tpu.matmul %6, %7, %cst_6 {dimension_numbers = #tpu.dot_dimension_numbers<[1], [0], [0], [1], [0, 0, 1, 1], [], []>} : vector<2x512xbf16>, vector<512x1024xbf16>, vector<2x1024xf32> -> vector<2x1024xf32>
    %c0_7 = arith.constant 0 : index
    %c0_8 = arith.constant 0 : index
    %9 = vector.load %arg3[%c0_7, %c0_8] : memref<1x1024xf32, #tpu.memory_space<vmem>>, vector<1x1024xf32>
    %10 = vector.broadcast %9 : vector<1x1024xf32> to vector<2x1024xf32>
    %11 = arith.addf %8, %10 : vector<2x1024xf32>
    %cst_9 = arith.constant 0.000000e+00 : f32
    %12 = vector.broadcast %cst_9 : f32 to vector<2x1024xf32>
    %13 = arith.maximumf %11, %12 : vector<2x1024xf32>
    %14 = vector.extract_strided_slice %13 {offsets = [0, 0], sizes = [2, 128], strides = [1, 1]} : vector<2x1024xf32> to vector<2x128xf32>
    %c0_10 = arith.constant 0 : index
    %c0_11 = arith.constant 0 : index
    %c0_12 = arith.constant 0 : index
    %15 = vector.load %arg6[%c0_10, %c0_11, %c0_12] : memref<2x8x128xf32, #tpu.memory_space<vmem>>, vector<2x1x128xf32>
    %16 = vector.shape_cast %15 : vector<2x1x128xf32> to vector<2x128xf32>
    %17 = vector.shape_cast %14 : vector<2x128xf32> to vector<2x1x128xf32>
    tpu.vector_store %arg6[%c0_10, %c0_11, %c0_12], %17 {strides = array<i32>} : memref<2x8x128xf32, #tpu.memory_space<vmem>>, vector<2x1x128xf32>,
    %18 = vector.extract_strided_slice %13 {offsets = [0, 128], sizes = [2, 128], strides = [1, 1]} : vector<2x1024xf32> to vector<2x128xf32>
    %c0_13 = arith.constant 0 : index
    %c1 = arith.constant 1 : index
    %c0_14 = arith.constant 0 : index
    %19 = vector.load %arg6[%c0_13, %c1, %c0_14] : memref<2x8x128xf32, #tpu.memory_space<vmem>>, vector<2x1x128xf32>
    %20 = vector.shape_cast %19 : vector<2x1x128xf32> to vector<2x128xf32>
    %21 = vector.shape_cast %18 : vector<2x128xf32> to vector<2x1x128xf32>
    tpu.vector_store %arg6[%c0_13, %c1, %c0_14], %21 {strides = array<i32>} : memref<2x8x128xf32, #tpu.memory_space<vmem>>, vector<2x1x128xf32>,
    %22 = vector.extract_strided_slice %13 {offsets = [0, 256], sizes = [2, 128], strides = [1, 1]} : vector<2x1024xf32> to vector<2x128xf32>
    %c0_15 = arith.constant 0 : index
    %c2 = arith.constant 2 : index
    %c0_16 = arith.constant 0 : index
    %23 = vector.load %arg6[%c0_15, %c2, %c0_16] : memref<2x8x128xf32, #tpu.memory_space<vmem>>, vector<2x1x128xf32>
    %24 = vector.shape_cast %23 : vector<2x1x128xf32> to vector<2x128xf32>
    %25 = vector.shape_cast %22 : vector<2x128xf32> to vector<2x1x128xf32>
    tpu.vector_store %arg6[%c0_15, %c2, %c0_16], %25 {strides = array<i32>} : memref<2x8x128xf32, #tpu.memory_space<vmem>>, vector<2x1x128xf32>,
    %26 = vector.extract_strided_slice %13 {offsets = [0, 384], sizes = [2, 128], strides = [1, 1]} : vector<2x1024xf32> to vector<2x128xf32>
    %c0_17 = arith.constant 0 : index
    %c3 = arith.constant 3 : index
    %c0_18 = arith.constant 0 : index
    %27 = vector.load %arg6[%c0_17, %c3, %c0_18] : memref<2x8x128xf32, #tpu.memory_space<vmem>>, vector<2x1x128xf32>
    %28 = vector.shape_cast %27 : vector<2x1x128xf32> to vector<2x128xf32>
    %29 = vector.shape_cast %26 : vector<2x128xf32> to vector<2x1x128xf32>
    tpu.vector_store %arg6[%c0_17, %c3, %c0_18], %29 {strides = array<i32>} : memref<2x8x128xf32, #tpu.memory_space<vmem>>, vector<2x1x128xf32>,
    %30 = vector.extract_strided_slice %13 {offsets = [0, 512], sizes = [2, 128], strides = [1, 1]} : vector<2x1024xf32> to vector<2x128xf32>
    %c0_19 = arith.constant 0 : index
    %c4 = arith.constant 4 : index
    %c0_20 = arith.constant 0 : index
    %31 = vector.load %arg6[%c0_19, %c4, %c0_20] : memref<2x8x128xf32, #tpu.memory_space<vmem>>, vector<2x1x128xf32>
    %32 = vector.shape_cast %31 : vector<2x1x128xf32> to vector<2x128xf32>
    %33 = vector.shape_cast %30 : vector<2x128xf32> to vector<2x1x128xf32>
    tpu.vector_store %arg6[%c0_19, %c4, %c0_20], %33 {strides = array<i32>} : memref<2x8x128xf32, #tpu.memory_space<vmem>>, vector<2x1x128xf32>,
    %34 = vector.extract_strided_slice %13 {offsets = [0, 640], sizes = [2, 128], strides = [1, 1]} : vector<2x1024xf32> to vector<2x128xf32>
    %c0_21 = arith.constant 0 : index
    %c5 = arith.constant 5 : index
    %c0_22 = arith.constant 0 : index
    %35 = vector.load %arg6[%c0_21, %c5, %c0_22] : memref<2x8x128xf32, #tpu.memory_space<vmem>>, vector<2x1x128xf32>
    %36 = vector.shape_cast %35 : vector<2x1x128xf32> to vector<2x128xf32>
    %37 = vector.shape_cast %34 : vector<2x128xf32> to vector<2x1x128xf32>
    tpu.vector_store %arg6[%c0_21, %c5, %c0_22], %37 {strides = array<i32>} : memref<2x8x128xf32, #tpu.memory_space<vmem>>, vector<2x1x128xf32>,
    %38 = vector.extract_strided_slice %13 {offsets = [0, 768], sizes = [2, 128], strides = [1, 1]} : vector<2x1024xf32> to vector<2x128xf32>
    %c0_23 = arith.constant 0 : index
    %c6 = arith.constant 6 : index
    %c0_24 = arith.constant 0 : index
    %39 = vector.load %arg6[%c0_23, %c6, %c0_24] : memref<2x8x128xf32, #tpu.memory_space<vmem>>, vector<2x1x128xf32>
    %40 = vector.shape_cast %39 : vector<2x1x128xf32> to vector<2x128xf32>
    %41 = vector.shape_cast %38 : vector<2x128xf32> to vector<2x1x128xf32>
    tpu.vector_store %arg6[%c0_23, %c6, %c0_24], %41 {strides = array<i32>} : memref<2x8x128xf32, #tpu.memory_space<vmem>>, vector<2x1x128xf32>,
    %42 = vector.extract_strided_slice %13 {offsets = [0, 896], sizes = [2, 128], strides = [1, 1]} : vector<2x1024xf32> to vector<2x128xf32>
    %c0_25 = arith.constant 0 : index
    %c7 = arith.constant 7 : index
    %c0_26 = arith.constant 0 : index
    %43 = vector.load %arg6[%c0_25, %c7, %c0_26] : memref<2x8x128xf32, #tpu.memory_space<vmem>>, vector<2x1x128xf32>
    %44 = vector.shape_cast %43 : vector<2x1x128xf32> to vector<2x128xf32>
    %45 = vector.shape_cast %42 : vector<2x128xf32> to vector<2x1x128xf32>
    tpu.vector_store %arg6[%c0_25, %c7, %c0_26], %45 {strides = array<i32>} : memref<2x8x128xf32, #tpu.memory_space<vmem>>, vector<2x1x128xf32>,
    %c0_27 = arith.constant 0 : index
    %c0_28 = arith.constant 0 : index
    %c0_29 = arith.constant 0 : index
    %46 = vector.load %arg6[%c0_27, %c0_28, %c0_29] : memref<2x8x128xf32, #tpu.memory_space<vmem>>, vector<2x8x128xf32>
    %47 = vector.shape_cast %46 : vector<2x8x128xf32> to vector<16x128xf32>
    %48 = arith.truncf %47 : vector<16x128xf32> to vector<16x128xbf16>
    %c0_30 = arith.constant 0 : index
    %c0_31 = arith.constant 0 : index
    %49 = vector.load %arg4[%c0_30, %c0_31] : memref<128x256xbf16, #tpu.memory_space<vmem>>, vector<128x256xbf16>
    %cst_32 = arith.constant dense<0.000000e+00> : vector<16x256xf32>
    %50 = tpu.matmul %48, %49, %cst_32 {dimension_numbers = #tpu.dot_dimension_numbers<[1], [0], [0], [1], [0, 0, 1, 1], [], []>} : vector<16x128xbf16>, vector<128x256xbf16>, vector<16x256xf32> -> vector<16x256xf32>
    %c0_33 = arith.constant 0 : index
    %c0_34 = arith.constant 0 : index
    %51 = vector.load %arg5[%c0_33, %c0_34] : memref<16x256xf32, #tpu.memory_space<vmem>>, vector<16x256xf32>
    tpu.vector_store %arg5[%c0_33, %c0_34], %50 {strides = array<i32>} : memref<16x256xf32, #tpu.memory_space<vmem>>, vector<16x256xf32>,
    return
  }
}

</mosaic_0001>

<bundles_post_ra>
// kernel: tpu_custom_call.1
= control target key start
LH: loop header
LB: loop body
LE: loop exit
PB: predicated region body
PF: predicated region fallthrough
CT: control target
= control target key end

     0   :  { %10 = vsyncpa [#allocation4], 0  ;;  %s4285_s0 = inlined_call_operand.hbm [shape: f32[2,512], index: 0, kind: input, shape index: {}]   ;;  %s4286_s1 = inlined_call_operand.hbm [shape: bf16[512,512], index: 1, kind: input, shape index: {}]   ;;  %s4287_s2 = inlined_call_operand.hbm [shape: bf16[512,1024], index: 2, kind: input, shape index: {}]   ;;  %s4288_s3 = inlined_call_operand.hbm [shape: f32[1,1024], index: 3, kind: input, shape index: {}]   ;;  %s4289_s4 = inlined_call_operand.hbm [shape: bf16[128,256], index: 4, kind: input, shape index: {}]   ;;  %s4290_s5 = inlined_call_operand.hbm [shape: f32[16,256], index: 5, kind: output, shape index: {}]  }
   0x1   :  { %11 = vsyncpa [#allocation7], 0 }
   0x2   :  { %12 = vsyncpa [#allocation10], 0 }
   0x3   :  { %13 = vsyncpa [#allocation5], 0  ;;  %s4124_s18 = smov [#allocation6]  }
   0x4   :  { %s29_s19 = sshll.u32 %s4124_s18, 4  ;;  %s30_s19 = int_to_ptr.vmem [resolvable:$true] %s29_s19 }
   0x5   :  { %s4004_s20 = scalar_lea.vmem %s30_s19, 16384  ;;  %p4009_p1 = scmp.lt.s32.totalorder %s30_s19, %s30_s19 }
   0x6   :  { %p4005_p0 = scmp.ne.s32.totalorder %s30_s19, %s4004_s20  ;;  %p4010_p2 = scmp.lt.s32.totalorder %s4004_s20, %s4004_s20 }
   0x8   :  { %p4011_p3 = por %p4010_p2, %p4009_p1 }
   0xa   :  { %p4012_p4 = pnand %p4011_p3, %p4005_p0 }
   0xc   :  { %4015 = shalt.err (!%p4012_p4)
}
   0xd   :  { %s4125_s21 = smov 256   ;;  %s4126_s22 = smov 16  }
   0xe   :  { %35 = dma.hbm_to_vmem [thread:$0]  %s4286_s1, 16384, %s30_s19, [#allocation7], %s4125_s21, %s4125_s21, %s4126_s22  }
   0xf   :  { %s4127_s25 = smov [#allocation9]   ;;  %s4128_s27 = smov [#allocation3]  }
  0x10   :  { %s54_s26 = sshll.u32 %s4127_s25, 4  ;;  %s20_s28 = sshll.u32 %s4128_s27, 4  ;;  %s55_s26 = int_to_ptr.vmem [resolvable:$true] %s54_s26  ;;  %s21_s28 = int_to_ptr.vmem [resolvable:$true] %s20_s28 }
  0x11   :  { %s4024_s29 = scalar_lea.vmem %s55_s26, 128  ;;  %p4029_p6 = scmp.lt.s32.totalorder %s55_s26, %s55_s26 }
  0x12   :  { %p4025_p5 = scmp.ne.s32.totalorder %s55_s26, %s4024_s29  ;;  %p4030_p7 = scmp.lt.s32.totalorder %s4024_s29, %s4024_s29 }
  0x14   :  { %p4031_p8 = por %p4030_p7, %p4029_p6 }
  0x16   :  { %p4032_p9 = pnand %p4031_p8, %p4025_p5 }
  0x18   :  { %4035 = shalt.err (!%p4032_p9)
}
  0x19   :  { %57 = dma.hbm_to_vmem [thread:$0]  %s4288_s3, 128, %s55_s26, [#allocation10]  }
  0x1a   :  { %s4044_s7 = scalar_lea.vmem %s21_s28, 128  ;;  %p4049_p11 = scmp.lt.s32.totalorder %s21_s28, %s21_s28 }
  0x1b   :  { %p4045_p10 = scmp.ne.s32.totalorder %s21_s28, %s4044_s7  ;;  %p4050_p12 = scmp.lt.s32.totalorder %s4044_s7, %s4044_s7 }
  0x1d   :  { %p4051_p13 = por %p4050_p12, %p4049_p11 }
  0x1f   :  { %p4052_p0 = pnand %p4051_p13, %p4045_p10 }
  0x21   :  { %4055 = shalt.err (!%p4052_p0)
}
  0x22   :  { %23 = dma.hbm_to_vmem [thread:$0]  %s4285_s0, 128, %s21_s28, [#allocation4]  }
  0x23   :  { %s4129_s9 = smov [#allocation8]  }
  0x24   :  { %s41_s10 = sshll.u32 %s4129_s9, 4  ;;  %s42_s10 = int_to_ptr.vmem [resolvable:$true] %s41_s10 }
  0x25   :  { %s4064_s11 = scalar_lea.vmem %s42_s10, 32768  ;;  %p4069_p2 = scmp.lt.s32.totalorder %s42_s10, %s42_s10 }
  0x26   :  { %p4065_p1 = scmp.ne.s32.totalorder %s42_s10, %s4064_s11  ;;  %p4070_p3 = scmp.lt.s32.totalorder %s4064_s11, %s4064_s11 }
  0x28   :  { %p4071_p4 = por %p4070_p3, %p4069_p2 }
  0x2a   :  { %p4072_p5 = pnand %p4071_p4, %p4065_p1 }
  0x2c   :  { %4075 = shalt.err (!%p4072_p5)
}
  0x2d   :  { %s4130_s3 = smov 512   ;;  %s4131_s12 = smov 32  }
  0x2e   :  { %47 = dma.hbm_to_vmem [thread:$0]  %s4287_s2, 32768, %s42_s10, [#allocation7], %s4130_s3, %s4130_s3, %s4131_s12  }
  0x2f   :  { %s4132_s15 = smov [#allocation11]  }
  0x30   :  { %s63_s16 = sshll.u32 %s4132_s15, 4  ;;  %s64_s16 = int_to_ptr.vmem [resolvable:$true] %s63_s16 }
  0x31   :  { %s4084_s0 = scalar_lea.vmem %s64_s16, 2048  ;;  %p4089_p7 = scmp.lt.s32.totalorder %s64_s16, %s64_s16 }
  0x32   :  { %p4085_p6 = scmp.ne.s32.totalorder %s64_s16, %s4084_s0  ;;  %p4090_p8 = scmp.lt.s32.totalorder %s4084_s0, %s4084_s0 }
  0x34   :  { %p4091_p9 = por %p4090_p8, %p4089_p7 }
  0x36   :  { %p4092_p10 = pnand %p4091_p9, %p4085_p6 }
  0x38   :  { %4095 = shalt.err (!%p4092_p10)
}
  0x39   :  { %s4133_s17 = smov 128   ;;  %s4134_s18 = smov 8  }
  0x3a   :  { %69 = dma.hbm_to_vmem [thread:$0]  %s4289_s4, 2048, %s64_s16, [#allocation10], %s4133_s17, %s4133_s17, %s4134_s18  }
  0x3b   :  { %4116 = dma.done.wait [#allocation4], 128  }
  0x3c   :  { %4117 = vsyncadd [#allocation4], 4294967168 }
  0x3d   :  { %4118 = dma.done.wait [#allocation7], 49152  }
  0x3e   :  { %4119 = vsyncadd [#allocation7], 4294918144 }
  0x3f   :  { %4120 = dma.done.wait [#allocation10], 2176  }
  0x40   :  { %4121 = vsyncadd [#allocation10], 4294965120  ;;  %v3779_v0 = vld [vmem:[#allocation6 + $0xe4] ss:$16 sps:$4 sm:$0xff]   ;;  %v3783_v2 = vld [vmem:[#allocation6 + $0xe0] ss:$16 sps:$4 sm:$0xff]   ;;  %v92_v38 = vlaneseq }
  0x41   :  { %v3781_v1 = vld [vmem:[#allocation6 + $0x2e4] ss:$16 sps:$4 sm:$0xff]   ;;  %881 = vmatprep.subr.bf16.mxu0 %v3779_v0  ;;  %v3784_v3 = vld [vmem:[#allocation6 + $0x2e0] ss:$16 sps:$4 sm:$0xff]   ;;  %v4135_v36 = vmov 1983009808  }
  0x42   :  { %922 = vmatprep.subr.bf16.mxu1 %v3781_v1  ;;  %v3785_v4 = vld [vmem:[#allocation6 + $0xc4] ss:$16 sps:$4 sm:$0xff]   ;;  %882 = vmatpush1.bf16.msra.mxu0 %v3783_v2  ;;  %v3789_v6 = vld [vmem:[#allocation6 + $0xc0] ss:$16 sps:$4 sm:$0xff]   ;;  %v90_v37 = vunpack.c.l.s4 %v4135_v36  ;;  %v4187_v43 = vshrl.u32 %v92_v38, 7  ;;  %v86_v52 = vld [vmem:[#allocation3] sm:$0xff] }
  0x43   :  { %923 = vmatpush1.bf16.msra.mxu1 %v3784_v3  ;;  %v3787_v5 = vld [vmem:[#allocation6 + $0x2c4] ss:$16 sps:$4 sm:$0xff]   ;;  %883 = vmatprep.subr.bf16.mxu0 %v3785_v4  ;;  %v3790_v7 = vld [vmem:[#allocation6 + $0x2c0] ss:$16 sps:$4 sm:$0xff]   ;;  %v88_v55 = vcombine.high %v86_v52, %v86_v52  ;;  %v3908_v36 = vld [vmem:[#allocation6 + $0x4c] ss:$16 sps:$4 sm:$0xff]  }
  0x44   :  { %924 = vmatprep.subr.bf16.mxu1 %v3787_v5  ;;  %v3791_v8 = vld [vmem:[#allocation6 + $0xa4] ss:$16 sps:$4 sm:$0xff]   ;;  %v3795_v10 = vld [vmem:[#allocation6 + $0xa0] ss:$16 sps:$4 sm:$0xff]   ;;  %v91_v42 = vunpack.c.0.s8 %v90_v37  ;;  %v3911_v37 = vld [vmem:[#allocation6 + $0x24c] ss:$16 sps:$4 sm:$0xff]  }
  0x45   :  { %v3793_v9 = vld [vmem:[#allocation6 + $0x2a4] ss:$16 sps:$4 sm:$0xff]   ;;  %v3796_v11 = vld [vmem:[#allocation6 + $0x2a0] ss:$16 sps:$4 sm:$0xff]   ;;  %v3906_v38 = vld [vmem:[#allocation6 + $0x48] ss:$16 sps:$4 sm:$0xff]  }
  0x46   :  { %884 = vmatpush1.bf16.msra.mxu0 %v3789_v6  ;;  %v3797_v12 = vld [vmem:[#allocation6 + $0x84] ss:$16 sps:$4 sm:$0xff]   ;;  %v3801_v14 = vld [vmem:[#allocation6 + $0x80] ss:$16 sps:$4 sm:$0xff]   ;;  %v94_v49 = vsub.s32 %v91_v42, %v4187_v43  ;;  %v3912_v42 = vld [vmem:[#allocation6 + $0x28] ss:$16 sps:$4 sm:$0xff]  }
  0x47   :  { %925 = vmatpush1.bf16.msra.mxu1 %v3790_v7  ;;  %885 = vmatprep.subr.bf16.mxu0 %v3791_v8  ;;  %v3799_v13 = vld [vmem:[#allocation6 + $0x284] ss:$16 sps:$4 sm:$0xff]   ;;  %v3802_v15 = vld [vmem:[#allocation6 + $0x280] ss:$16 sps:$4 sm:$0xff]   ;;  %s4138_s2 = smov [#allocation12]  }
  0x48   :  { %926 = vmatprep.subr.bf16.mxu1 %v3793_v9  ;;  %v3803_v16 = vld [vmem:[#allocation6 + $0x64] ss:$16 sps:$4 sm:$0xff]   ;;  %v3807_v18 = vld [vmem:[#allocation6 + $0x60] ss:$16 sps:$4 sm:$0xff]   ;;  %v95_v54 = vrot.slane %v86_v52, %v94_v49  ;;  %v102_v60 = vrot.slane %v88_v55, %v94_v49  ;;  %v3926_v49 = vld [vmem:[#allocation6 + $0x1ec] ss:$16 sps:$4 sm:$0xff]  }
  0x49   :  { %v3805_v17 = vld [vmem:[#allocation6 + $0x264] ss:$16 sps:$4 sm:$0xff]   ;;  %v3808_v19 = vld [vmem:[#allocation6 + $0x260] ss:$16 sps:$4 sm:$0xff]   ;;  %v3927_v52 = vld [vmem:[#allocation6 + $0x3e8] ss:$16 sps:$4 sm:$0xff]  }
  0x4a   :  { %886 = vmatpush1.bf16.msra.mxu0 %v3795_v10  ;;  %v3809_v20 = vld [vmem:[#allocation6 + $0x44] ss:$16 sps:$4 sm:$0xff]   ;;  %v3813_v22 = vld [vmem:[#allocation6 + $0x40] ss:$16 sps:$4 sm:$0xff]   ;;  %v103_v59 = vcombine.high %v95_v54, %v95_v54  ;;  %v104_v63 = vcombine.high %v102_v60, %v102_v60  ;;  %v3930_v55 = vld [vmem:[#allocation6 + $0x1c8] ss:$16 sps:$4 sm:$0xff]  }
  0x4b   :  { %927 = vmatpush1.bf16.msra.mxu1 %v3796_v11  ;;  %887 = vmatprep.subr.bf16.mxu0 %v3797_v12  ;;  %v3811_v21 = vld [vmem:[#allocation6 + $0x244] ss:$16 sps:$4 sm:$0xff]   ;;  %v3814_v23 = vld [vmem:[#allocation6 + $0x240] ss:$16 sps:$4 sm:$0xff]   ;;  %s3334_s4 = sshll.u32 %s4138_s2, 4  ;;  %s3335_s4 = int_to_ptr.vmem [resolvable:$true] %s3334_s4 }
  0x4c   :  { %928 = vmatprep.subr.bf16.mxu1 %v3799_v13  ;;  %v3815_v24 = vld [vmem:[#allocation6 + $0x24] ss:$16 sps:$4 sm:$0xff]   ;;  %v3819_v26 = vld [vmem:[#allocation6 + $0x20] ss:$16 sps:$4 sm:$0xff]   ;;  %v110_v62 = vpack.c.bf16 %v103_v59, %v103_v59  ;;  %v112_v3 = vpack.c.bf16 %v104_v63, %v104_v63  ;;  %v3936_v59 = vld [vmem:[#allocation6 + $0x1a8] ss:$16 sps:$4 sm:$0xff]   ;;  %p4101_p12 = scmp.lt.s32.totalorder %s3335_s4, %s3335_s4 }
  0x4d   :  { %v3817_v25 = vld [vmem:[#allocation6 + $0x224] ss:$16 sps:$4 sm:$0xff]   ;;  %v3820_v27 = vld [vmem:[#allocation6 + $0x220] ss:$16 sps:$4 sm:$0xff]   ;;  %v3942_v63 = vld [vmem:[#allocation6 + $0x188] ss:$16 sps:$4 sm:$0xff]  }
  0x4e   :  { %888 = vmatpush1.bf16.msra.mxu0 %v3801_v14  ;;  %v3821_v28 = vld [vmem:[#allocation6 + $0x4] ss:$16 sps:$4 sm:$0xff]   ;;  %v3825_v30 = vld [vmem:[#allocation6] ss:$16 sps:$4 sm:$0xff]   ;;  %913 = vmatprep.mubr.bf16.mxu0 %v110_v62  ;;  %v3878_v14 = vld [vmem:[#allocation6 + $0xec] ss:$16 sps:$4 sm:$0xff]  }
  0x4f   :  { %929 = vmatpush1.bf16.msra.mxu1 %v3802_v15  ;;  %889 = vmatprep.subr.bf16.mxu0 %v3803_v16  ;;  %v3823_v29 = vld [vmem:[#allocation6 + $0x204] ss:$16 sps:$4 sm:$0xff]   ;;  %v3826_v31 = vld [vmem:[#allocation6 + $0x200] ss:$16 sps:$4 sm:$0xff]   ;;  %v3881_v15 = vld [vmem:[#allocation6 + $0x2ec] ss:$16 sps:$4 sm:$0xff]   ;;  %v4190_v16 = vpack.c.bf16 %v95_v54, %v95_v54 }
  0x50   :  { %930 = vmatprep.subr.bf16.mxu1 %v3805_v17  ;;  %v3827_v32 = vld [vmem:[#allocation6 + $0x1e4] ss:$16 sps:$4 sm:$0xff]   ;;  %v3831_v34 = vld [vmem:[#allocation6 + $0x1e0] ss:$16 sps:$4 sm:$0xff]   ;;  %954 = vmatprep.mubr.bf16.mxu1 %v112_v3  ;;  %v4192_v17 = vpack.c.bf16 %v102_v60, %v102_v60  ;;  %v3935_v54 = vld [vmem:[#allocation6 + $0x3cc] ss:$16 sps:$4 sm:$0xff]  }
  0x51   :  { %v3829_v33 = vld [vmem:[#allocation6 + $0x3e4] ss:$16 sps:$4 sm:$0xff]   ;;  %v3832_v35 = vld [vmem:[#allocation6 + $0x3e0] ss:$16 sps:$4 sm:$0xff]   ;;  %v3939_v60 = vld [vmem:[#allocation6 + $0x3a8] ss:$16 sps:$4 sm:$0xff]  }
  0x52   :  { %890 = vmatpush1.bf16.msra.mxu0 %v3807_v18  ;;  %v3833_v39 = vld [vmem:[#allocation6 + $0x1c4] ss:$16 sps:$4 sm:$0xff]   ;;  %v3837_v41 = vld [vmem:[#allocation6 + $0x1c0] ss:$16 sps:$4 sm:$0xff]   ;;  %v3876_v18 = vld [vmem:[#allocation6 + $0xe8] ss:$16 sps:$4 sm:$0xff]  }
  0x53   :  { %931 = vmatpush1.bf16.msra.mxu1 %v3808_v19  ;;  %891 = vmatprep.subr.bf16.mxu0 %v3809_v20  ;;  %v3835_v40 = vld [vmem:[#allocation6 + $0x3c4] ss:$16 sps:$4 sm:$0xff]   ;;  %v3838_v44 = vld [vmem:[#allocation6 + $0x3c0] ss:$16 sps:$4 sm:$0xff]   ;;  %v3879_v19 = vld [vmem:[#allocation6 + $0x2e8] ss:$16 sps:$4 sm:$0xff]  }
  0x54   :  { %932 = vmatprep.subr.bf16.mxu1 %v3811_v21  ;;  %v3839_v45 = vld [vmem:[#allocation6 + $0x1a4] ss:$16 sps:$4 sm:$0xff]   ;;  %v3843_v47 = vld [vmem:[#allocation6 + $0x1a0] ss:$16 sps:$4 sm:$0xff]   ;;  %v3884_v20 = vld [vmem:[#allocation6 + $0xcc] ss:$16 sps:$4 sm:$0xff]  }
  0x55   :  { %v3841_v46 = vld [vmem:[#allocation6 + $0x3a4] ss:$16 sps:$4 sm:$0xff]   ;;  %v3844_v48 = vld [vmem:[#allocation6 + $0x3a0] ss:$16 sps:$4 sm:$0xff]   ;;  %v3887_v21 = vld [vmem:[#allocation6 + $0x2cc] ss:$16 sps:$4 sm:$0xff]  }
  0x56   :  { %892 = vmatpush1.bf16.msra.mxu0 %v3813_v22  ;;  %v3845_v50 = vld [vmem:[#allocation6 + $0x184] ss:$16 sps:$4 sm:$0xff]   ;;  %v3849_v53 = vld [vmem:[#allocation6 + $0x180] ss:$16 sps:$4 sm:$0xff]   ;;  %v3882_v22 = vld [vmem:[#allocation6 + $0xc8] ss:$16 sps:$4 sm:$0xff]  }
  0x57   :  { %933 = vmatpush1.bf16.msra.mxu1 %v3814_v23  ;;  %893 = vmatprep.subr.bf16.mxu0 %v3815_v24  ;;  %v3847_v51 = vld [vmem:[#allocation6 + $0x384] ss:$16 sps:$4 sm:$0xff]   ;;  %v3850_v56 = vld [vmem:[#allocation6 + $0x380] ss:$16 sps:$4 sm:$0xff]   ;;  %v3885_v23 = vld [vmem:[#allocation6 + $0x2c8] ss:$16 sps:$4 sm:$0xff]  }
  0x58   :  { %934 = vmatprep.subr.bf16.mxu1 %v3817_v25  ;;  %v3851_v57 = vld [vmem:[#allocation6 + $0x164] ss:$16 sps:$4 sm:$0xff]   ;;  %v3855_v61 = vld [vmem:[#allocation6 + $0x160] ss:$16 sps:$4 sm:$0xff]   ;;  %v3890_v24 = vld [vmem:[#allocation6 + $0xac] ss:$16 sps:$4 sm:$0xff]  }
  0x59   :  { %v3853_v58 = vld [vmem:[#allocation6 + $0x364] ss:$16 sps:$4 sm:$0xff]   ;;  %v3856_v0 = vld [vmem:[#allocation6 + $0x360] ss:$16 sps:$4 sm:$0xff]   ;;  %v3893_v25 = vld [vmem:[#allocation6 + $0x2ac] ss:$16 sps:$4 sm:$0xff]  }
  0x5a   :  { %894 = vmatpush1.bf16.msra.mxu0 %v3819_v26  ;;  %v3857_v1 = vld [vmem:[#allocation6 + $0x144] ss:$16 sps:$4 sm:$0xff]   ;;  %v3861_v4 = vld [vmem:[#allocation6 + $0x140] ss:$16 sps:$4 sm:$0xff]   ;;  %v3888_v26 = vld [vmem:[#allocation6 + $0xa8] ss:$16 sps:$4 sm:$0xff]  }
  0x5b   :  { %935 = vmatpush1.bf16.msra.mxu1 %v3820_v27  ;;  %895 = vmatprep.subr.bf16.mxu0 %v3821_v28  ;;  %v3859_v2 = vld [vmem:[#allocation6 + $0x344] ss:$16 sps:$4 sm:$0xff]   ;;  %v3862_v5 = vld [vmem:[#allocation6 + $0x340] ss:$16 sps:$4 sm:$0xff]   ;;  %v3891_v27 = vld [vmem:[#allocation6 + $0x2a8] ss:$16 sps:$4 sm:$0xff]  }
  0x5c   :  { %936 = vmatprep.subr.bf16.mxu1 %v3823_v29  ;;  %v3863_v6 = vld [vmem:[#allocation6 + $0x124] ss:$16 sps:$4 sm:$0xff]   ;;  %v3867_v8 = vld [vmem:[#allocation6 + $0x120] ss:$16 sps:$4 sm:$0xff]   ;;  %v3896_v28 = vld [vmem:[#allocation6 + $0x8c] ss:$16 sps:$4 sm:$0xff]  }
  0x5d   :  { %v3865_v7 = vld [vmem:[#allocation6 + $0x324] ss:$16 sps:$4 sm:$0xff]   ;;  %v3868_v9 = vld [vmem:[#allocation6 + $0x320] ss:$16 sps:$4 sm:$0xff]   ;;  %v3899_v29 = vld [vmem:[#allocation6 + $0x28c] ss:$16 sps:$4 sm:$0xff]  }
  0x5e   :  { %896 = vmatpush1.bf16.msra.mxu0 %v3825_v30  ;;  %v3869_v10 = vld [vmem:[#allocation6 + $0x104] ss:$16 sps:$4 sm:$0xff]   ;;  %v3873_v12 = vld [vmem:[#allocation6 + $0x100] ss:$16 sps:$4 sm:$0xff]   ;;  %v3894_v30 = vld [vmem:[#allocation6 + $0x88] ss:$16 sps:$4 sm:$0xff]  }
  0x5f   :  { %937 = vmatpush1.bf16.msra.mxu1 %v3826_v31  ;;  %897 = vmatprep.subr.bf16.mxu0 %v3827_v32  ;;  %v3871_v11 = vld [vmem:[#allocation6 + $0x304] ss:$16 sps:$4 sm:$0xff]   ;;  %v3874_v13 = vld [vmem:[#allocation6 + $0x300] ss:$16 sps:$4 sm:$0xff]   ;;  %v3897_v31 = vld [vmem:[#allocation6 + $0x288] ss:$16 sps:$4 sm:$0xff]  }
  0x60   :  { %938 = vmatprep.subr.bf16.mxu1 %v3829_v33  ;;  %v3902_v32 = vld [vmem:[#allocation6 + $0x6c] ss:$16 sps:$4 sm:$0xff]   ;;  %s4096_s23 = scalar_lea.vmem %s3335_s4, 512 }
  0x61   :  { %v3905_v33 = vld [vmem:[#allocation6 + $0x26c] ss:$16 sps:$4 sm:$0xff]   ;;  %p4097_p11 = scmp.ne.s32.totalorder %s3335_s4, %s4096_s23  ;;  %p4102_p13 = scmp.lt.s32.totalorder %s4096_s23, %s4096_s23 }
  0x62   :  { %898 = vmatpush2.bf16.msra.mxu0 %v3831_v34  ;;  %v3900_v34 = vld [vmem:[#allocation6 + $0x68] ss:$16 sps:$4 sm:$0xff]  }
  0x63   :  { %939 = vmatpush2.bf16.msra.mxu1 %v3832_v35  ;;  %899 = vmatprep.subr.bf16.mxu0 %v3833_v39  ;;  %v3903_v35 = vld [vmem:[#allocation6 + $0x268] ss:$16 sps:$4 sm:$0xff]   ;;  %p4103_p0 = por %p4102_p13, %p4101_p12 }
  0x64   :  { %940 = vmatprep.subr.bf16.mxu1 %v3835_v40  ;;  %v3909_v39 = vld [vmem:[#allocation6 + $0x248] ss:$16 sps:$4 sm:$0xff]   ;;  %v3914_v40 = vld [vmem:[#allocation6 + $0x2c] ss:$16 sps:$4 sm:$0xff]  }
  0x65   :  { %p4104_p1 = pnand %p4103_p0, %p4097_p11 }
  0x66   :  { %900 = vmatpush2.bf16.msra.mxu0 %v3837_v41  ;;  %v3917_v41 = vld [vmem:[#allocation6 + $0x22c] ss:$16 sps:$4 sm:$0xff]  }
  0x67   :  { %941 = vmatpush2.bf16.msra.mxu1 %v3838_v44  ;;  %901 = vmatprep.subr.bf16.mxu0 %v3839_v45  ;;  %v3915_v44 = vld [vmem:[#allocation6 + $0x228] ss:$16 sps:$4 sm:$0xff]   ;;  %v3920_v45 = vld [vmem:[#allocation6 + $0xc] ss:$16 sps:$4 sm:$0xff]  }
  0x68   :  { %942 = vmatprep.subr.bf16.mxu1 %v3841_v46  ;;  %v3923_v46 = vld [vmem:[#allocation6 + $0x20c] ss:$16 sps:$4 sm:$0xff]  }
  0x6a   :  { %902 = vmatpush2.bf16.msra.mxu0 %v3843_v47  ;;  %v3918_v47 = vld [vmem:[#allocation6 + $0x8] ss:$16 sps:$4 sm:$0xff]  }
  0x6b   :  { %943 = vmatpush2.bf16.msra.mxu1 %v3844_v48  ;;  %903 = vmatprep.subr.bf16.mxu0 %v3845_v50  ;;  %v3921_v48 = vld [vmem:[#allocation6 + $0x208] ss:$16 sps:$4 sm:$0xff]   ;;  %v3929_v50 = vld [vmem:[#allocation6 + $0x3ec] ss:$16 sps:$4 sm:$0xff]  }
  0x6c   :  { %944 = vmatprep.subr.bf16.mxu1 %v3847_v51  ;;  %v3924_v51 = vld [vmem:[#allocation6 + $0x1e8] ss:$16 sps:$4 sm:$0xff]  }
  0x6e   :  { %904 = vmatpush2.bf16.msra.mxu0 %v3849_v53  ;;  %v3932_v53 = vld [vmem:[#allocation6 + $0x1cc] ss:$16 sps:$4 sm:$0xff]  }
  0x6f   :  { %945 = vmatpush2.bf16.msra.mxu1 %v3850_v56  ;;  %905 = vmatprep.subr.bf16.mxu0 %v3851_v57  ;;  %v3933_v56 = vld [vmem:[#allocation6 + $0x3c8] ss:$16 sps:$4 sm:$0xff]   ;;  %v3938_v57 = vld [vmem:[#allocation6 + $0x1ac] ss:$16 sps:$4 sm:$0xff]  }
  0x70   :  { %946 = vmatprep.subr.bf16.mxu1 %v3853_v58  ;;  %v3941_v58 = vld [vmem:[#allocation6 + $0x3ac] ss:$16 sps:$4 sm:$0xff]  }
  0x72   :  { %906 = vmatpush2.bf16.msra.mxu0 %v3855_v61  ;;  %v3944_v61 = vld [vmem:[#allocation6 + $0x18c] ss:$16 sps:$4 sm:$0xff]  }
  0x73   :  { %947 = vmatpush2.bf16.msra.mxu1 %v3856_v0  ;;  %907 = vmatprep.subr.bf16.mxu0 %v3857_v1  ;;  %v3945_v0 = vld [vmem:[#allocation6 + $0x388] ss:$16 sps:$4 sm:$0xff]   ;;  %v3950_v1 = vld [vmem:[#allocation6 + $0x16c] ss:$16 sps:$4 sm:$0xff]  }
  0x74   :  { %948 = vmatprep.subr.bf16.mxu1 %v3859_v2  ;;  %v3953_v2 = vld [vmem:[#allocation6 + $0x36c] ss:$16 sps:$4 sm:$0xff]  }
  0x76   :  { %908 = vmatpush2.bf16.msra.mxu0 %v3861_v4  ;;  %v3951_v4 = vld [vmem:[#allocation6 + $0x368] ss:$16 sps:$4 sm:$0xff]  }
  0x77   :  { %949 = vmatpush2.bf16.msra.mxu1 %v3862_v5  ;;  %909 = vmatprep.subr.bf16.mxu0 %v3863_v6  ;;  %v3956_v5 = vld [vmem:[#allocation6 + $0x14c] ss:$16 sps:$4 sm:$0xff]  }
  0x78   :  { %950 = vmatprep.subr.bf16.mxu1 %v3865_v7  ;;  %v3959_v6 = vld [vmem:[#allocation6 + $0x34c] ss:$16 sps:$4 sm:$0xff]   ;;  %v3954_v7 = vld [vmem:[#allocation6 + $0x148] ss:$16 sps:$4 sm:$0xff]  }
  0x7a   :  { %910 = vmatpush2.bf16.msra.mxu0 %v3867_v8  ;;  %v3957_v8 = vld [vmem:[#allocation6 + $0x348] ss:$16 sps:$4 sm:$0xff]  }
  0x7b   :  { %951 = vmatpush2.bf16.msra.mxu1 %v3868_v9  ;;  %911 = vmatprep.subr.bf16.mxu0 %v3869_v10  ;;  %v3962_v9 = vld [vmem:[#allocation6 + $0x12c] ss:$16 sps:$4 sm:$0xff]  }
  0x7c   :  { %952 = vmatprep.subr.bf16.mxu1 %v3871_v11  ;;  %v3965_v10 = vld [vmem:[#allocation6 + $0x32c] ss:$16 sps:$4 sm:$0xff]   ;;  %v3960_v11 = vld [vmem:[#allocation6 + $0x128] ss:$16 sps:$4 sm:$0xff]  }
  0x7e   :  { %912 = vmatpush2.bf16.msra.mxu0 %v3873_v12  ;;  %v3963_v12 = vld [vmem:[#allocation6 + $0x328] ss:$16 sps:$4 sm:$0xff]  }
  0x7f   :  { %953 = vmatpush2.bf16.msra.mxu1 %v3874_v13  ;;  %963 = vmatprep.subr.bf16.mxu0 %v3878_v14  ;;  %v3968_v13 = vld [vmem:[#allocation6 + $0x10c] ss:$16 sps:$4 sm:$0xff]  }
  0x80   :  { %1004 = vmatprep.subr.bf16.mxu1 %v3881_v15  ;;  %v3971_v14 = vld [vmem:[#allocation6 + $0x30c] ss:$16 sps:$4 sm:$0xff]   ;;  %v1109_v15 = vld [vmem:[#allocation8 + $0x1c0] sm:$0xff] }
  0x81   :  { %914 = vmatmul.mubr.bf16.vlgmr.msra.gmra.mxu0 %v4190_v16 }
  0x82   :  { %955 = vmatmul.mubr.bf16.vlgmr.msra.gmra.mxu1 %v4192_v17  ;;  %964 = vmatpush1.bf16.msra.mxu0 %v3876_v18  ;;  %v1113_v18 = vld [vmem:[#allocation8 + $0x1e0] sm:$0xff] }
  0x83   :  { %1005 = vmatpush1.bf16.msra.mxu1 %v3879_v19  ;;  %965 = vmatprep.subr.bf16.mxu0 %v3884_v20  ;;  %v3966_v19 = vld [vmem:[#allocation6 + $0x108] ss:$16 sps:$4 sm:$0xff]  }
  0x84   :  { %1006 = vmatprep.subr.bf16.mxu1 %v3887_v21  ;;  %995 = vmatprep.mubr.bf16.mxu0 %v110_v62  ;;  %v3947_v62 = vld [vmem:[#allocation6 + $0x38c] ss:$16 sps:$4 sm:$0xff]   ;;  %v3969_v20 = vld [vmem:[#allocation6 + $0x308] ss:$16 sps:$4 sm:$0xff]   ;;  %v3533_v21 = vcombine.high %v1109_v15, %v1113_v18 }
  0x85   :  { %1036 = vmatprep.mubr.bf16.mxu1 %v112_v3  ;;  %v3948_v3 = vld [vmem:[#allocation6 + $0x168] ss:$16 sps:$4 sm:$0xff]  }
  0x86   :  { %966 = vmatpush1.bf16.msra.mxu0 %v3882_v22  ;;  %v1101_v22 = vld [vmem:[#allocation8 + $0x180] sm:$0xff] }
  0x87   :  { %1007 = vmatpush1.bf16.msra.mxu1 %v3885_v23  ;;  %967 = vmatprep.subr.bf16.mxu0 %v3890_v24  ;;  %v1105_v23 = vld [vmem:[#allocation8 + $0x1a0] sm:$0xff]  ;;  %v3532_v24 = vcombine.low %v1109_v15, %v1113_v18 }
  0x88   :  { %1008 = vmatprep.subr.bf16.mxu1 %v3893_v25  ;;  %v3525_v25 = vcombine.high %v1101_v22, %v1105_v23  ;;  %v1201_v15 = vld [vmem:[#allocation8 + $0x4a0] sm:$0xff] }
  0x8a   :  { %968 = vmatpush1.bf16.msra.mxu0 %v3888_v26  ;;  %v1093_v26 = vld [vmem:[#allocation8 + $0x140] sm:$0xff] }
  0x8b   :  { %1009 = vmatpush1.bf16.msra.mxu1 %v3891_v27  ;;  %969 = vmatprep.subr.bf16.mxu0 %v3896_v28  ;;  %v1097_v27 = vld [vmem:[#allocation8 + $0x160] sm:$0xff]  ;;  %v3524_v28 = vcombine.low %v1101_v22, %v1105_v23 }
  0x8c   :  { %1010 = vmatprep.subr.bf16.mxu1 %v3899_v29  ;;  %v3517_v29 = vcombine.high %v1093_v26, %v1097_v27  ;;  %v1157_v22 = vld [vmem:[#allocation8 + $0x340] sm:$0xff] }
  0x8d   :  { %v1161_v23 = vld [vmem:[#allocation8 + $0x360] sm:$0xff] }
  0x8e   :  { %970 = vmatpush1.bf16.msra.mxu0 %v3894_v30  ;;  %v1085_v30 = vld [vmem:[#allocation8 + $0x100] sm:$0xff] }
  0x8f   :  { %1011 = vmatpush1.bf16.msra.mxu1 %v3897_v31  ;;  %971 = vmatprep.subr.bf16.mxu0 %v3902_v32  ;;  %v1089_v31 = vld [vmem:[#allocation8 + $0x120] sm:$0xff]  ;;  %v3516_v32 = vcombine.low %v1093_v26, %v1097_v27 }
  0x90   :  { %1012 = vmatprep.subr.bf16.mxu1 %v3905_v33  ;;  %v3509_v33 = vcombine.high %v1085_v30, %v1089_v31 }
  0x92   :  { %972 = vmatpush1.bf16.msra.mxu0 %v3900_v34  ;;  %v1237_v34 = vld [vmem:[#allocation8 + $0x5c0] sm:$0xff] }
  0x93   :  { %1013 = vmatpush1.bf16.msra.mxu1 %v3903_v35  ;;  %973 = vmatprep.subr.bf16.mxu0 %v3908_v36  ;;  %v1241_v35 = vld [vmem:[#allocation8 + $0x5e0] sm:$0xff]  ;;  %v4198_v36 = vld [vmem:[#allocation8 + $0x1c8] sm:$0xff] }
  0x94   :  { %1014 = vmatprep.subr.bf16.mxu1 %v3911_v37  ;;  %v1077_v37 = vld [vmem:[#allocation8 + $0xc0] sm:$0xff] }
  0x96   :  { %974 = vmatpush1.bf16.msra.mxu0 %v3906_v38  ;;  %v1081_v38 = vld [vmem:[#allocation8 + $0xe0] sm:$0xff] }
  0x97   :  { %1015 = vmatpush1.bf16.msra.mxu1 %v3909_v39  ;;  %975 = vmatprep.subr.bf16.mxu0 %v3914_v40  ;;  %v3661_v39 = vcombine.high %v1237_v34, %v1241_v35 }
  0x98   :  { %1016 = vmatprep.subr.bf16.mxu1 %v3917_v41  ;;  %v3508_v41 = vcombine.low %v1085_v30, %v1089_v31  ;;  %v1149_v30 = vld [vmem:[#allocation8 + $0x300] sm:$0xff] }
  0x99   :  { %v1153_v31 = vld [vmem:[#allocation8 + $0x320] sm:$0xff] }
  0x9a   :  { %976 = vmatpush1.bf16.msra.mxu0 %v3912_v42  ;;  %v3501_v42 = vcombine.high %v1077_v37, %v1081_v38 }
  0x9b   :  { %1017 = vmatpush1.bf16.msra.mxu1 %v3915_v44  ;;  %977 = vmatprep.subr.bf16.mxu0 %v3920_v45  ;;  %v1069_v44 = vld [vmem:[#allocation8 + $0x80] sm:$0xff] }
  0x9c   :  { %1018 = vmatprep.subr.bf16.mxu1 %v3923_v46  ;;  %v1073_v45 = vld [vmem:[#allocation8 + $0xa0] sm:$0xff] }
  0x9d   :  { %v1229_v46 = vld [vmem:[#allocation8 + $0x580] sm:$0xff] }
  0x9e   :  { %978 = vmatpush1.bf16.msra.mxu0 %v3918_v47  ;;  %v1233_v47 = vld [vmem:[#allocation8 + $0x5a0] sm:$0xff] }
  0x9f   :  { %1019 = vmatpush1.bf16.msra.mxu1 %v3921_v48  ;;  %979 = vmatprep.subr.bf16.mxu0 %v3926_v49  ;;  %v3652_v48 = vcombine.low %v1229_v46, %v1233_v47  ;;  %v3653_v49 = vcombine.high %v1229_v46, %v1233_v47  ;;  %v3572_v46 = vcombine.low %v1149_v30, %v1153_v31 }
  0xa0   :  { %1020 = vmatprep.subr.bf16.mxu1 %v3929_v50  ;;  %v3500_v50 = vcombine.low %v1077_v37, %v1081_v38  ;;  %v3580_v37 = vcombine.low %v1157_v22, %v1161_v23  ;;  %v3573_v38 = vcombine.high %v1149_v30, %v1153_v31 }
  0xa2   :  { %980 = vmatpush2.bf16.msra.mxu0 %v3924_v51  ;;  %v3493_v51 = vcombine.high %v1069_v44, %v1073_v45 }
  0xa3   :  { %1021 = vmatpush2.bf16.msra.mxu1 %v3927_v52  ;;  %981 = vmatprep.subr.bf16.mxu0 %v3932_v53  ;;  %v1061_v52 = vld [vmem:[#allocation8 + $0x40] sm:$0xff] }
  0xa4   :  { %1022 = vmatprep.subr.bf16.mxu1 %v3935_v54  ;;  %v1065_v53 = vld [vmem:[#allocation8 + $0x60] sm:$0xff] }
  0xa5   :  { %v1221_v54 = vld [vmem:[#allocation8 + $0x540] sm:$0xff] }
  0xa6   :  { %982 = vmatpush2.bf16.msra.mxu0 %v3930_v55  ;;  %v1225_v55 = vld [vmem:[#allocation8 + $0x560] sm:$0xff] }
  0xa7   :  { %1023 = vmatpush2.bf16.msra.mxu1 %v3933_v56  ;;  %983 = vmatprep.subr.bf16.mxu0 %v3938_v57  ;;  %v3644_v56 = vcombine.low %v1221_v54, %v1225_v55  ;;  %v3645_v57 = vcombine.high %v1221_v54, %v1225_v55 }
  0xa8   :  { %1024 = vmatprep.subr.bf16.mxu1 %v3941_v58  ;;  %v3492_v58 = vcombine.low %v1069_v44, %v1073_v45 }
  0xaa   :  { %984 = vmatpush2.bf16.msra.mxu0 %v3936_v59  ;;  %v3485_v59 = vcombine.high %v1061_v52, %v1065_v53 }
  0xab   :  { %1025 = vmatpush2.bf16.msra.mxu1 %v3939_v60  ;;  %985 = vmatprep.subr.bf16.mxu0 %v3944_v61  ;;  %v1053_v60 = vld [vmem:[#allocation8] sm:$0xff] }
  0xac   :  { %1026 = vmatprep.subr.bf16.mxu1 %v3947_v62  ;;  %v1057_v61 = vld [vmem:[#allocation8 + $0x20] sm:$0xff] }
  0xad   :  { %v1213_v62 = vld [vmem:[#allocation8 + $0x500] sm:$0xff] }
  0xae   :  { %986 = vmatpush2.bf16.msra.mxu0 %v3942_v63  ;;  %v1217_v63 = vld [vmem:[#allocation8 + $0x520] sm:$0xff] }
  0xaf   :  { %1027 = vmatpush2.bf16.msra.mxu1 %v3945_v0  ;;  %987 = vmatprep.subr.bf16.mxu0 %v3950_v1  ;;  %v3636_v0 = vcombine.low %v1213_v62, %v1217_v63  ;;  %v3637_v1 = vcombine.high %v1213_v62, %v1217_v63 }
  0xb0   :  { %1028 = vmatprep.subr.bf16.mxu1 %v3953_v2  ;;  %v3484_v2 = vcombine.low %v1061_v52, %v1065_v53 }
  0xb2   :  { %988 = vmatpush2.bf16.msra.mxu0 %v3948_v3  ;;  %v3477_v3 = vcombine.high %v1053_v60, %v1057_v61 }
  0xb3   :  { %1029 = vmatpush2.bf16.msra.mxu1 %v3951_v4  ;;  %989 = vmatprep.subr.bf16.mxu0 %v3956_v5  ;;  %v1173_v4 = vld [vmem:[#allocation8 + $0x3c0] sm:$0xff] }
  0xb4   :  { %1030 = vmatprep.subr.bf16.mxu1 %v3959_v6  ;;  %v1177_v5 = vld [vmem:[#allocation8 + $0x3e0] sm:$0xff] }
  0xb5   :  { %v1205_v6 = vld [vmem:[#allocation8 + $0x4c0] sm:$0xff] }
  0xb6   :  { %990 = vmatpush2.bf16.msra.mxu0 %v3954_v7  ;;  %v1209_v7 = vld [vmem:[#allocation8 + $0x4e0] sm:$0xff] }
  0xb7   :  { %1031 = vmatpush2.bf16.msra.mxu1 %v3957_v8  ;;  %991 = vmatprep.subr.bf16.mxu0 %v3962_v9  ;;  %v3628_v8 = vcombine.low %v1205_v6, %v1209_v7  ;;  %v3629_v9 = vcombine.high %v1205_v6, %v1209_v7 }
  0xb8   :  { %1032 = vmatprep.subr.bf16.mxu1 %v3965_v10  ;;  %v3476_v10 = vcombine.low %v1053_v60, %v1057_v61 }
  0xba   :  { %992 = vmatpush2.bf16.msra.mxu0 %v3960_v11  ;;  %v3597_v11 = vcombine.high %v1173_v4, %v1177_v5 }
  0xbb   :  { %1033 = vmatpush2.bf16.msra.mxu1 %v3963_v12  ;;  %993 = vmatprep.subr.bf16.mxu0 %v3968_v13  ;;  %v1165_v12 = vld [vmem:[#allocation8 + $0x380] sm:$0xff] }
  0xbc   :  { %1034 = vmatprep.subr.bf16.mxu1 %v3971_v14  ;;  %v1169_v13 = vld [vmem:[#allocation8 + $0x3a0] sm:$0xff] }
  0xbd   :  { %v1197_v14 = vld [vmem:[#allocation8 + $0x480] sm:$0xff] }
  0xbe   :  { %994 = vmatpush2.bf16.msra.mxu0 %v3966_v19  ;;  %v3620_v18 = vcombine.low %v1197_v14, %v1201_v15  ;;  %v3621_v19 = vcombine.high %v1197_v14, %v1201_v15  ;;  %v1261_v14 = vld [vmem:[#allocation8 + $0x680] sm:$0xff] }
  0xbf   :  { %1035 = vmatpush2.bf16.msra.mxu1 %v3969_v20  ;;  %2631 = vmatprep.subr.bf16.mxu0 %v3533_v21  ;;  %v3596_v20 = vcombine.low %v1173_v4, %v1177_v5  ;;  %v3589_v21 = vcombine.high %v1165_v12, %v1169_v13  ;;  %v1265_v15 = vld [vmem:[#allocation8 + $0x6a0] sm:$0xff] }
  0xc0   :  { %2672 = vmatprep.subr.bf16.mxu1 %v3661_v39  ;;  %v1141_v39 = vld [vmem:[#allocation8 + $0x2c0] sm:$0xff] }
  0xc1   :  { %996 = vmatmul.mubr.bf16.vlgmr.msra.gmra.mxu0 %v4190_v16  ;;  %v4200_v16 = vld [vmem:[#allocation8 + $0x1e8] sm:$0xff] }
  0xc2   :  { %1037 = vmatmul.mubr.bf16.vlgmr.msra.gmra.mxu1 %v4192_v17  ;;  %2632 = vmatpush1.bf16.msra.mxu0 %v3532_v24  ;;  %v3660_v17 = vcombine.low %v1237_v34, %v1241_v35  ;;  %v3534_v40 = vcombine.low %v4198_v36, %v4200_v16  ;;  %v1189_v24 = vld [vmem:[#allocation8 + $0x440] sm:$0xff] }
  0xc3   :  { %2633 = vmatprep.subr.bf16.mxu0 %v3525_v25  ;;  %v1193_v25 = vld [vmem:[#allocation8 + $0x460] sm:$0xff] }
  0xc4   :  { %2673 = vmatpush1.bf16.msra.mxu1 %v3660_v17  ;;  %v3612_v26 = vcombine.low %v1189_v24, %v1193_v25  ;;  %v3613_v27 = vcombine.high %v1189_v24, %v1193_v25  ;;  %v1145_v17 = vld [vmem:[#allocation8 + $0x2e0] sm:$0xff] }
  0xc5   :  { %2674 = vmatprep.subr.bf16.mxu1 %v3653_v49  ;;  %v3565_v47 = vcombine.high %v1141_v39, %v1145_v17  ;;  %v1137_v49 = vld [vmem:[#allocation8 + $0x2a0] sm:$0xff]  ;;  %v3564_v54 = vcombine.low %v1141_v39, %v1145_v17 }
  0xc6   :  { %2634 = vmatpush1.bf16.msra.mxu0 %v3524_v28  ;;  %v3588_v28 = vcombine.low %v1165_v12, %v1169_v13  ;;  %v3535_v13 = vcombine.high %v4198_v36, %v4200_v16  ;;  %v1245_v24 = vld [vmem:[#allocation8 + $0x600] sm:$0xff]  ;;  %v1074_v36 = vld [vmem:[#allocation8 + $0xa8] sm:$0xff] }
  0xc7   :  { %2635 = vmatprep.subr.bf16.mxu0 %v3517_v29  ;;  %v3581_v29 = vcombine.high %v1157_v22, %v1161_v23  ;;  %v1249_v25 = vld [vmem:[#allocation8 + $0x620] sm:$0xff] }
  0xc8   :  { %2675 = vmatpush1.bf16.msra.mxu1 %v3652_v48  ;;  %v1133_v48 = vld [vmem:[#allocation8 + $0x280] sm:$0xff] }
  0xc9   :  { %2676 = vmatprep.subr.bf16.mxu1 %v3645_v57  ;;  %v3557_v55 = vcombine.high %v1133_v48, %v1137_v49  ;;  %v1129_v57 = vld [vmem:[#allocation8 + $0x260] sm:$0xff]  ;;  %v3556_v62 = vcombine.low %v1133_v48, %v1137_v49 }
  0xca   :  { %2636 = vmatpush1.bf16.msra.mxu0 %v3516_v32  ;;  %v1181_v32 = vld [vmem:[#allocation8 + $0x400] sm:$0xff] }
  0xcb   :  { %2637 = vmatprep.subr.bf16.mxu0 %v3509_v33  ;;  %v1185_v33 = vld [vmem:[#allocation8 + $0x420] sm:$0xff] }
  0xcc   :  { %2677 = vmatpush1.bf16.msra.mxu1 %v3644_v56  ;;  %v3604_v34 = vcombine.low %v1181_v32, %v1185_v33  ;;  %v3605_v35 = vcombine.high %v1181_v32, %v1185_v33  ;;  %v1125_v56 = vld [vmem:[#allocation8 + $0x240] sm:$0xff] }
  0xcd   :  { %2678 = vmatprep.subr.bf16.mxu1 %v3637_v1  ;;  %v3549_v63 = vcombine.high %v1125_v56, %v1129_v57  ;;  %v1121_v1 = vld [vmem:[#allocation8 + $0x220] sm:$0xff]  ;;  %v3548_v6 = vcombine.low %v1125_v56, %v1129_v57  ;;  %v1090_v56 = vld [vmem:[#allocation8 + $0x128] sm:$0xff] }
  0xce   :  { %2638 = vmatpush1.bf16.msra.mxu0 %v3508_v41  ;;  %v1301_v41 = vld [vmem:[#allocation8 + $0x7c0] sm:$0xff] }
  0xcf   :  { %2639 = vmatprep.subr.bf16.mxu0 %v3501_v42  ;;  %v1305_v42 = vld [vmem:[#allocation8 + $0x7e0] sm:$0xff] }
  0xd0   :  { %2679 = vmatpush1.bf16.msra.mxu1 %v3636_v0  ;;  %v3724_v44 = vcombine.low %v1301_v41, %v1305_v42  ;;  %v3725_v45 = vcombine.high %v1301_v41, %v1305_v42  ;;  %v1117_v0 = vld [vmem:[#allocation8 + $0x200] sm:$0xff] }
  0xd1   :  { %2680 = vmatprep.subr.bf16.mxu1 %v3629_v9  ;;  %v3541_v7 = vcombine.high %v1117_v0, %v1121_v1  ;;  %v1273_v9 = vld [vmem:[#allocation8 + $0x6e0] sm:$0xff]  ;;  %v3540_v12 = vcombine.low %v1117_v0, %v1121_v1  ;;  %v1062_v0 = vld [vmem:[#allocation8 + $0x48] sm:$0xff] }
  0xd2   :  { %2640 = vmatpush1.bf16.msra.mxu0 %v3500_v50  ;;  %v1293_v50 = vld [vmem:[#allocation8 + $0x780] sm:$0xff]  ;;  %v1066_v1 = vld [vmem:[#allocation8 + $0x68] sm:$0xff] }
  0xd3   :  { %2641 = vmatprep.subr.bf16.mxu0 %v3493_v51  ;;  %v1297_v51 = vld [vmem:[#allocation8 + $0x7a0] sm:$0xff] }
  0xd4   :  { %2681 = vmatpush1.bf16.msra.mxu1 %v3628_v8  ;;  %v3716_v52 = vcombine.low %v1293_v50, %v1297_v51  ;;  %v3717_v53 = vcombine.high %v1293_v50, %v1297_v51  ;;  %v1269_v8 = vld [vmem:[#allocation8 + $0x6c0] sm:$0xff]  ;;  %v1094_v51 = vld [vmem:[#allocation8 + $0x148] sm:$0xff] }
  0xd5   :  { %2682 = vmatprep.subr.bf16.mxu1 %v3621_v19  ;;  %v3685_v19 = vcombine.high %v1261_v14, %v1265_v15 }
  0xd6   :  { %2642 = vmatpush1.bf16.msra.mxu0 %v3492_v58  ;;  %v1285_v58 = vld [vmem:[#allocation8 + $0x740] sm:$0xff] }
  0xd7   :  { %2643 = vmatprep.subr.bf16.mxu0 %v3485_v59  ;;  %v1289_v59 = vld [vmem:[#allocation8 + $0x760] sm:$0xff] }
  0xd8   :  { %2683 = vmatpush1.bf16.msra.mxu1 %v3620_v18  ;;  %v3708_v60 = vcombine.low %v1285_v58, %v1289_v59  ;;  %v3709_v61 = vcombine.high %v1285_v58, %v1289_v59  ;;  %v3684_v18 = vcombine.low %v1261_v14, %v1265_v15  ;;  %v1078_v59 = vld [vmem:[#allocation8 + $0xc8] sm:$0xff] }
  0xd9   :  { %2684 = vmatprep.subr.bf16.mxu1 %v3613_v27  ;;  %v3668_v27 = vcombine.low %v1245_v24, %v1249_v25 }
  0xda   :  { %2644 = vmatpush1.bf16.msra.mxu0 %v3484_v2  ;;  %v1277_v2 = vld [vmem:[#allocation8 + $0x700] sm:$0xff] }
  0xdb   :  { %2645 = vmatprep.subr.bf16.mxu0 %v3477_v3  ;;  %v1281_v3 = vld [vmem:[#allocation8 + $0x720] sm:$0xff] }
  0xdc   :  { %2685 = vmatpush1.bf16.msra.mxu1 %v3612_v26  ;;  %v3700_v4 = vcombine.low %v1277_v2, %v1281_v3  ;;  %v3701_v5 = vcombine.high %v1277_v2, %v1281_v3  ;;  %v3669_v26 = vcombine.high %v1245_v24, %v1249_v25  ;;  %v3487_v3 = vcombine.high %v1062_v0, %v1066_v1 }
  0xdd   :  { %2686 = vmatprep.subr.bf16.mxu1 %v3605_v35 }
  0xde   :  { %2646 = vmatpush1.bf16.msra.mxu0 %v3476_v10  ;;  %v3692_v10 = vcombine.low %v1269_v8, %v1273_v9 }
  0xdf   :  { %2647 = vmatprep.subr.bf16.mxu0 %v3597_v11  ;;  %v3693_v11 = vcombine.high %v1269_v8, %v1273_v9  ;;  %v1174_v8 = vld [vmem:[#allocation8 + $0x3c8] sm:$0xff] }
  0xe0   :  { %2687 = vmatpush1.bf16.msra.mxu1 %v3604_v34  ;;  %v1178_v9 = vld [vmem:[#allocation8 + $0x3e8] sm:$0xff] }
  0xe1   :  { %2688 = vmatprep.subr.bf16.mxu1 %v3725_v45  ;;  %v1106_v45 = vld [vmem:[#allocation8 + $0x1a8] sm:$0xff]  ;;  %v3598_v14 = vcombine.low %v1174_v8, %v1178_v9 }
  0xe2   :  { %2648 = vmatpush2.bf16.msra.mxu0 %v3596_v20  ;;  %v1253_v20 = vld [vmem:[#allocation8 + $0x640] sm:$0xff] }
  0xe3   :  { %2649 = vmatprep.subr.bf16.mxu0 %v3589_v21  ;;  %v1257_v21 = vld [vmem:[#allocation8 + $0x660] sm:$0xff] }
  0xe4   :  { %2689 = vmatpush2.bf16.msra.mxu1 %v3724_v44  ;;  %v3677_v22 = vcombine.high %v1253_v20, %v1257_v21  ;;  %v3676_v23 = vcombine.low %v1253_v20, %v1257_v21  ;;  %v1102_v44 = vld [vmem:[#allocation8 + $0x188] sm:$0xff] }
  0xe5   :  { %2690 = vmatprep.subr.bf16.mxu1 %v3717_v53  ;;  %v3527_v50 = vcombine.high %v1102_v44, %v1106_v45  ;;  %v3526_v53 = vcombine.low %v1102_v44, %v1106_v45  ;;  %v1122_v44 = vld [vmem:[#allocation8 + $0x228] sm:$0xff] }
  0xe6   :  { %2650 = vmatpush2.bf16.msra.mxu0 %v3588_v28  ;;  %v4206_v28 = vld [vmem:[#allocation8 + $0x5c8] sm:$0xff] }
  0xe7   :  { %2651 = vmatprep.subr.bf16.mxu0 %v3581_v29  ;;  %v4208_v29 = vld [vmem:[#allocation8 + $0x5e8] sm:$0xff] }
  0xe8   :  { %2691 = vmatpush2.bf16.msra.mxu1 %v3716_v52  ;;  %v3663_v30 = vcombine.high %v4206_v28, %v4208_v29  ;;  %v3662_v31 = vcombine.low %v4206_v28, %v4208_v29  ;;  %v1098_v52 = vld [vmem:[#allocation8 + $0x168] sm:$0xff] }
  0xe9   :  { %2692 = vmatprep.subr.bf16.mxu1 %v3709_v61  ;;  %v3518_v57 = vcombine.low %v1094_v51, %v1098_v52 }
  0xea   :  { %2652 = vmatpush2.bf16.msra.mxu0 %v3580_v37 }
  0xeb   :  { %2653 = vmatprep.subr.bf16.mxu0 %v3573_v38 }
  0xec   :  { %2693 = vmatpush2.bf16.msra.mxu1 %v3708_v60  ;;  %v1082_v60 = vld [vmem:[#allocation8 + $0xe8] sm:$0xff] }
  0xed   :  { %2694 = vmatprep.subr.bf16.mxu1 %v3701_v5  ;;  %v3502_v16 = vcombine.low %v1078_v59, %v1082_v60  ;;  %v1058_v5 = vld [vmem:[#allocation8 + $0x28] sm:$0xff] }
  0xee   :  { %2654 = vmatpush2.bf16.msra.mxu0 %v3572_v46 }
  0xef   :  { %2655 = vmatprep.subr.bf16.mxu0 %v3565_v47 }
  0xf0   :  { %2695 = vmatpush2.bf16.msra.mxu1 %v3700_v4  ;;  %v1054_v4 = vld [vmem:[#allocation8 + $0x8] sm:$0xff] }
  0xf1   :  { %2696 = vmatprep.subr.bf16.mxu1 %v3693_v11  ;;  %v3599_v11 = vcombine.high %v1174_v8, %v1178_v9  ;;  %v1226_v8 = vld [vmem:[#allocation8 + $0x568] sm:$0xff]  ;;  %v1095_v9 = vld [vmem:[#allocation8 + $0x150] sm:$0xff] }
  0xf2   :  { %2656 = vmatpush2.bf16.msra.mxu0 %v3564_v54  ;;  %v3519_v54 = vcombine.high %v1094_v51, %v1098_v52  ;;  %v1111_v52 = vld [vmem:[#allocation8 + $0x1d0] sm:$0xff] }
  0xf3   :  { %2657 = vmatprep.subr.bf16.mxu0 %v3557_v55  ;;  %v1086_v55 = vld [vmem:[#allocation8 + $0x108] sm:$0xff] }
  0xf4   :  { %2697 = vmatpush2.bf16.msra.mxu1 %v3692_v10  ;;  %v3511_v58 = vcombine.high %v1086_v55, %v1090_v56  ;;  %v3510_v61 = vcombine.low %v1086_v55, %v1090_v56  ;;  %v3478_v10 = vcombine.low %v1054_v4, %v1058_v5 }
  0xf5   :  { %2698 = vmatprep.subr.bf16.mxu1 %v3685_v19  ;;  %v1162_v19 = vld [vmem:[#allocation8 + $0x368] sm:$0xff] }
  0xf6   :  { %2658 = vmatpush2.bf16.msra.mxu0 %v3556_v62  ;;  %v3503_v62 = vcombine.high %v1078_v59, %v1082_v60 }
  0xf7   :  { %2659 = vmatprep.subr.bf16.mxu0 %v3549_v63  ;;  %v1070_v63 = vld [vmem:[#allocation8 + $0x88] sm:$0xff] }
  0xf8   :  { %2699 = vmatpush2.bf16.msra.mxu1 %v3684_v18  ;;  %v3494_v2 = vcombine.low %v1070_v63, %v1074_v36  ;;  %v1158_v18 = vld [vmem:[#allocation8 + $0x348] sm:$0xff] }
  0xf9   :  { %2700 = vmatprep.subr.bf16.mxu1 %v3677_v22  ;;  %v3583_v21 = vcombine.high %v1158_v18, %v1162_v19  ;;  %v1150_v22 = vld [vmem:[#allocation8 + $0x308] sm:$0xff]  ;;  %v3582_v24 = vcombine.low %v1158_v18, %v1162_v19  ;;  %v1087_v19 = vld [vmem:[#allocation8 + $0x110] sm:$0xff] }
  0xfa   :  { %2660 = vmatpush2.bf16.msra.mxu0 %v3548_v6  ;;  %v3486_v6 = vcombine.low %v1062_v0, %v1066_v1  ;;  %v1103_v0 = vld [vmem:[#allocation8 + $0x190] sm:$0xff]  ;;  %v1218_v18 = vld [vmem:[#allocation8 + $0x528] sm:$0xff] }
  0xfb   :  { %2661 = vmatprep.subr.bf16.mxu0 %v3541_v7  ;;  %v3479_v7 = vcombine.high %v1054_v4, %v1058_v5  ;;  %v1107_v1 = vld [vmem:[#allocation8 + $0x1b0] sm:$0xff]  ;;  %v1222_v5 = vld [vmem:[#allocation8 + $0x548] sm:$0xff] }
  0xfc   :  { %2701 = vmatpush2.bf16.msra.mxu1 %v3676_v23  ;;  %v1154_v23 = vld [vmem:[#allocation8 + $0x328] sm:$0xff] }
  0xfd   :  { %2702 = vmatprep.subr.bf16.mxu1 %v3669_v26  ;;  %v3575_v25 = vcombine.high %v1150_v22, %v1154_v23  ;;  %v1142_v26 = vld [vmem:[#allocation8 + $0x2c8] sm:$0xff] }
  0xfe   :  { %2662 = vmatpush2.bf16.msra.mxu0 %v3540_v12  ;;  %v1166_v12 = vld [vmem:[#allocation8 + $0x388] sm:$0xff] }
  0xff   :  { %2713 = vmatprep.subr.bf16.mxu0 %v3535_v13  ;;  %v1170_v13 = vld [vmem:[#allocation8 + $0x3a8] sm:$0xff] }
 0x100   :  { %2703 = vmatpush2.bf16.msra.mxu1 %v3668_v27  ;;  %v3591_v15 = vcombine.high %v1166_v12, %v1170_v13  ;;  %v3590_v20 = vcombine.low %v1166_v12, %v1170_v13  ;;  %v1146_v27 = vld [vmem:[#allocation8 + $0x2e8] sm:$0xff]  ;;  %v3528_v12 = vcombine.low %v1103_v0, %v1107_v1  ;;  %v3647_v13 = vcombine.high %v1222_v5, %v1226_v8 }
 0x101   :  { %2754 = vmatprep.subr.bf16.mxu1 %v3663_v30  ;;  %v3574_v30 = vcombine.low %v1150_v22, %v1154_v23  ;;  %v1206_v22 = vld [vmem:[#allocation8 + $0x4c8] sm:$0xff] }
 0x102   :  { %v1210_v23 = vld [vmem:[#allocation8 + $0x4e8] sm:$0xff] }
 0x141   :  { %v915_v32 = vpop.f32.mrf.mxu0 }
 0x142   :  { %v956_v33 = vpop.f32.mrf.mxu1 }
 0x143   :  { %v957_v34 = vadd.f32 %v956_v33, %v915_v32  ;;  %v917_v35 = vpop.f32.mrf.mxu0  ;;  %v3567_v32 = vcombine.high %v1142_v26, %v1146_v27  ;;  %v1134_v33 = vld [vmem:[#allocation8 + $0x288] sm:$0xff] }
 0x144   :  { %v958_v37 = vpop.f32.mrf.mxu1 }
 0x145   :  { %v959_v38 = vadd.f32 %v958_v37, %v917_v35  ;;  %v1045_v39 = vmax.f32 %v957_v34, 0.0  ;;  %v919_v17 = vpop.f32.mrf.mxu0  ;;  %v1138_v34 = vld [vmem:[#allocation8 + $0x2a8] sm:$0xff]  ;;  %v3566_v35 = vcombine.low %v1142_v26, %v1146_v27 }
 0x146   :  { %v960_v41 = vpop.f32.mrf.mxu1  ;;  %v3559_v37 = vcombine.high %v1134_v33, %v1138_v34  ;;  %v3558_v17 = vcombine.low %v1134_v33, %v1138_v34  ;;  %v1198_v33 = vld [vmem:[#allocation8 + $0x488] sm:$0xff] }
 0x147   :  { %v1046_v42 = vmax.f32 %v959_v38, 0.0  ;;  %v920_v46 = vpop.f32.mrf.mxu0  ;;  %v4216_v49 = vpack.c.bf16 %v1045_v39, %v1045_v39  ;;  %v1126_v38 = vld [vmem:[#allocation8 + $0x248] sm:$0xff] }
 0x148   :  { %v961_v47 = vpop.f32.mrf.mxu1  ;;  %v1130_v39 = vld [vmem:[#allocation8 + $0x268] sm:$0xff] }
 0x149   :  { %v4214_v48 = vpack.c.bf16 %v1046_v42, %v1046_v42  ;;  %v3551_v41 = vcombine.high %v1126_v38, %v1130_v39  ;;  %v1118_v42 = vld [vmem:[#allocation8 + $0x208] sm:$0xff]  ;;  %v3550_v45 = vcombine.low %v1126_v38, %v1130_v39  ;;  %v3630_v38 = vcombine.low %v1206_v22, %v1210_v23 }
 0x14a   :  { %v1202_v34 = vld [vmem:[#allocation8 + $0x4a8] sm:$0xff] }
 0x14b   :  { %2663 = vmatprep.mubr.bf16.mxu0 %v4214_v48 }
 0x14c   :  { %2664 = vmatmul.mubr.bf16.vlgmr.msra.gmra.mxu0 %v4216_v49 }
 0x14d   :  { %2714 = vmatpush1.bf16.msra.mxu0 %v3534_v40  ;;  %2745 = vmatprep.mubr.bf16.mxu0 %v4214_v48  ;;  %v3495_v40 = vcombine.high %v1070_v63, %v1074_v36  ;;  %v1230_v63 = vld [vmem:[#allocation8 + $0x588] sm:$0xff] }
 0x14e   :  { %2715 = vmatprep.subr.bf16.mxu0 %v3527_v50  ;;  %v3543_v50 = vcombine.high %v1118_v42, %v1122_v44 }
 0x151   :  { %2716 = vmatpush1.bf16.msra.mxu0 %v3526_v53  ;;  %v1115_v53 = vld [vmem:[#allocation8 + $0x1f0] sm:$0xff] }
 0x152   :  { %2717 = vmatprep.subr.bf16.mxu0 %v3519_v54 }
 0x155   :  { %2718 = vmatpush1.bf16.msra.mxu0 %v3518_v57  ;;  %v3542_v57 = vcombine.low %v1118_v42, %v1122_v44  ;;  %v1190_v42 = vld [vmem:[#allocation8 + $0x448] sm:$0xff] }
 0x156   :  { %2719 = vmatprep.subr.bf16.mxu0 %v3511_v58  ;;  %v1194_v44 = vld [vmem:[#allocation8 + $0x468] sm:$0xff] }
 0x159   :  { %2720 = vmatpush1.bf16.msra.mxu0 %v3510_v61  ;;  %v3537_v61 = vcombine.high %v1111_v52, %v1115_v53 }
 0x15a   :  { %2721 = vmatprep.subr.bf16.mxu0 %v3503_v62 }
 0x15d   :  { %2722 = vmatpush1.bf16.msra.mxu0 %v3502_v16 }
 0x15e   :  { %2723 = vmatprep.subr.bf16.mxu0 %v3495_v40  ;;  %v1234_v40 = vld [vmem:[#allocation8 + $0x5a8] sm:$0xff] }
 0x161   :  { %2724 = vmatpush1.bf16.msra.mxu0 %v3494_v2 }
 0x162   :  { %2725 = vmatprep.subr.bf16.mxu0 %v3487_v3  ;;  %v3536_v3 = vcombine.low %v1111_v52, %v1115_v53  ;;  %v1182_v53 = vld [vmem:[#allocation8 + $0x408] sm:$0xff] }
 0x165   :  { %2726 = vmatpush1.bf16.msra.mxu0 %v3486_v6  ;;  %v3655_v6 = vcombine.high %v1230_v63, %v1234_v40 }
 0x166   :  { %2727 = vmatprep.subr.bf16.mxu0 %v3479_v7  ;;  %v3529_v7 = vcombine.high %v1103_v0, %v1107_v1 }
 0x169   :  { %2728 = vmatpush1.bf16.msra.mxu0 %v3478_v10  ;;  %v1099_v10 = vld [vmem:[#allocation8 + $0x170] sm:$0xff] }
 0x16a   :  { %2729 = vmatprep.subr.bf16.mxu0 %v3599_v11  ;;  %v3654_v11 = vcombine.low %v1230_v63, %v1234_v40  ;;  %v3520_v28 = vcombine.low %v1095_v9, %v1099_v10  ;;  %v1175_v63 = vld [vmem:[#allocation8 + $0x3d0] sm:$0xff] }
 0x16d   :  { %2730 = vmatpush2.bf16.msra.mxu0 %v3598_v14  ;;  %v3521_v14 = vcombine.high %v1095_v9, %v1099_v10 }
 0x16e   :  { %2731 = vmatprep.subr.bf16.mxu0 %v3591_v15  ;;  %v1214_v15 = vld [vmem:[#allocation8 + $0x508] sm:$0xff] }
 0x16f   :  { %v3639_v29 = vcombine.high %v1214_v15, %v1218_v18  ;;  %v3638_v26 = vcombine.low %v1214_v15, %v1218_v18  ;;  %v1163_v15 = vld [vmem:[#allocation8 + $0x370] sm:$0xff] }
 0x171   :  { %2732 = vmatpush2.bf16.msra.mxu0 %v3590_v20  ;;  %v1091_v20 = vld [vmem:[#allocation8 + $0x130] sm:$0xff] }
 0x172   :  { %2733 = vmatprep.subr.bf16.mxu0 %v3583_v21  ;;  %v3646_v21 = vcombine.low %v1222_v5, %v1226_v8  ;;  %v3512_v27 = vcombine.low %v1087_v19, %v1091_v20  ;;  %v1298_v5 = vld [vmem:[#allocation8 + $0x7a8] sm:$0xff] }
 0x175   :  { %2734 = vmatpush2.bf16.msra.mxu0 %v3582_v24  ;;  %v1079_v24 = vld [vmem:[#allocation8 + $0xd0] sm:$0xff] }
 0x176   :  { %2735 = vmatprep.subr.bf16.mxu0 %v3575_v25  ;;  %v1083_v25 = vld [vmem:[#allocation8 + $0xf0] sm:$0xff] }
 0x177   :  { %v3504_v39 = vcombine.low %v1079_v24, %v1083_v25 }
 0x179   :  { %2736 = vmatpush2.bf16.msra.mxu0 %v3574_v30  ;;  %v3631_v30 = vcombine.high %v1206_v22, %v1210_v23  ;;  %v1155_v22 = vld [vmem:[#allocation8 + $0x330] sm:$0xff] }
 0x17a   :  { %2737 = vmatprep.subr.bf16.mxu0 %v3567_v32  ;;  %v3505_v32 = vcombine.high %v1079_v24, %v1083_v25 }
 0x17d   :  { %2738 = vmatpush2.bf16.msra.mxu0 %v3566_v35  ;;  %v1071_v35 = vld [vmem:[#allocation8 + $0x90] sm:$0xff] }
 0x17e   :  { %2739 = vmatprep.subr.bf16.mxu0 %v3559_v37  ;;  %v1075_v37 = vld [vmem:[#allocation8 + $0xb0] sm:$0xff] }
 0x181   :  { %2740 = vmatpush2.bf16.msra.mxu0 %v3558_v17  ;;  %v997_v46 = vpop.f32.mrf.mxu0  ;;  %v3623_v17 = vcombine.high %v1198_v33, %v1202_v34 }
 0x182   :  { %v1038_v47 = vpop.f32.mrf.mxu1  ;;  %2741 = vmatprep.subr.bf16.mxu0 %v3551_v41  ;;  %v3497_v41 = vcombine.high %v1071_v35, %v1075_v37 }
 0x183   :  { %v1039_v51 = vadd.f32 %v1038_v47, %v997_v46  ;;  %v999_v54 = vpop.f32.mrf.mxu0  ;;  %v1067_v46 = vld [vmem:[#allocation8 + $0x70] sm:$0xff]  ;;  %v3622_v47 = vcombine.low %v1198_v33, %v1202_v34 }
 0x184   :  { %v1040_v55 = vpop.f32.mrf.mxu1  ;;  %v1147_v33 = vld [vmem:[#allocation8 + $0x2f0] sm:$0xff] }
 0x185   :  { %v1041_v56 = vadd.f32 %v1040_v55, %v999_v54  ;;  %2742 = vmatpush2.bf16.msra.mxu0 %v3550_v45  ;;  %v1047_v58 = vmax.f32 %v1039_v51, 0.0  ;;  %v1001_v59 = vpop.f32.mrf.mxu0  ;;  %v1063_v45 = vld [vmem:[#allocation8 + $0x50] sm:$0xff]  ;;  %v3615_v51 = vcombine.high %v1190_v42, %v1194_v44  ;;  %v1186_v54 = vld [vmem:[#allocation8 + $0x428] sm:$0xff] }
 0x186   :  { %v1042_v60 = vpop.f32.mrf.mxu1  ;;  %2743 = vmatprep.subr.bf16.mxu0 %v3543_v50  ;;  %v3496_v50 = vcombine.low %v1071_v35, %v1075_v37  ;;  %v3489_v52 = vcombine.high %v1063_v45, %v1067_v46  ;;  %v1055_v55 = vld [vmem:[#allocation8 + $0x10] sm:$0xff]  ;;  %v3607_v59 = vcombine.high %v1182_v53, %v1186_v54 }
 0x187   :  { %v1048_v62 = vmax.f32 %v1041_v56, 0.0  ;;  %v1002_v36 = vpop.f32.mrf.mxu0  ;;  %v4226_v4 = vpack.c.bf16 %v1047_v58, %v1047_v58  ;;  %v1059_v56 = vld [vmem:[#allocation8 + $0x30] sm:$0xff]  ;;  %v3488_v58 = vcombine.low %v1063_v45, %v1067_v46 }
 0x188   :  { %v1043_v16 = vpop.f32.mrf.mxu1  ;;  %v3481_v60 = vcombine.high %v1055_v55, %v1059_v56  ;;  %v1179_v36 = vld [vmem:[#allocation8 + $0x3f0] sm:$0xff]  ;;  %v3480_v40 = vcombine.low %v1055_v55, %v1059_v56 }
 0x189   :  { %v4224_v2 = vpack.c.bf16 %v1048_v62, %v1048_v62  ;;  %2744 = vmatpush2.bf16.msra.mxu0 %v3542_v57  ;;  %v3614_v57 = vcombine.low %v1190_v42, %v1194_v44  ;;  %v1306_v62 = vld [vmem:[#allocation8 + $0x7e8] sm:$0xff]  ;;  %v3606_v16 = vcombine.low %v1182_v53, %v1186_v54  ;;  %v3601_v1 = vcombine.high %v1175_v63, %v1179_v36  ;;  %v1139_v42 = vld [vmem:[#allocation8 + $0x2b0] sm:$0xff] }
 0x18a   :  { %2795 = vmatprep.subr.bf16.mxu0 %v3537_v61  ;;  %v1302_v61 = vld [vmem:[#allocation8 + $0x7c8] sm:$0xff]  ;;  %v3600_v9 = vcombine.low %v1175_v63, %v1179_v36  ;;  %v1131_v53 = vld [vmem:[#allocation8 + $0x270] sm:$0xff] }
 0x18b   :  { %2704 = vmatprep.mubr.bf16.mxu1 %v4224_v2  ;;  %v3727_v0 = vcombine.high %v1302_v61, %v1306_v62  ;;  %v3726_v8 = vcombine.low %v1302_v61, %v1306_v62  ;;  %v1123_v61 = vld [vmem:[#allocation8 + $0x230] sm:$0xff] }
 0x18c   :  { %2746 = vmatmul.mubr.bf16.vlgmr.msra.gmra.mxu0 %v4216_v49  ;;  %2705 = vmatmul.mubr.bf16.vlgmr.msra.gmra.mxu1 %v4226_v4 }
 0x18d   :  { %2755 = vmatpush1.bf16.msra.mxu1 %v3662_v31  ;;  %2796 = vmatpush1.bf16.msra.mxu0 %v3536_v3  ;;  %v3513_v31 = vcombine.high %v1087_v19, %v1091_v20  ;;  %v1294_v3 = vld [vmem:[#allocation8 + $0x788] sm:$0xff] }
 0x18e   :  { %2827 = vmatprep.mubr.bf16.mxu0 %v4214_v48  ;;  %2786 = vmatprep.mubr.bf16.mxu1 %v4224_v2  ;;  %v3719_v10 = vcombine.high %v1294_v3, %v1298_v5  ;;  %v3718_v18 = vcombine.low %v1294_v3, %v1298_v5  ;;  %v1116_v3 = vld [vmem:[#allocation8 + $0x1f8] sm:$0xff] }
 0x18f   :  { %2756 = vmatprep.subr.bf16.mxu1 %v3655_v6  ;;  %2797 = vmatprep.subr.bf16.mxu0 %v3529_v7  ;;  %v1167_v6 = vld [vmem:[#allocation8 + $0x390] sm:$0xff] }
 0x190   :  { %v1171_v7 = vld [vmem:[#allocation8 + $0x3b0] sm:$0xff] }
 0x191   :  { %2757 = vmatpush1.bf16.msra.mxu1 %v3654_v11  ;;  %2798 = vmatpush1.bf16.msra.mxu0 %v3528_v12  ;;  %v3593_v11 = vcombine.high %v1167_v6, %v1171_v7  ;;  %v1286_v12 = vld [vmem:[#allocation8 + $0x748] sm:$0xff]  ;;  %v3592_v19 = vcombine.low %v1167_v6, %v1171_v7 }
 0x192   :  { %2758 = vmatprep.subr.bf16.mxu1 %v3647_v13  ;;  %2799 = vmatprep.subr.bf16.mxu0 %v3521_v14  ;;  %v1290_v13 = vld [vmem:[#allocation8 + $0x768] sm:$0xff]  ;;  %v1159_v14 = vld [vmem:[#allocation8 + $0x350] sm:$0xff] }
 0x193   :  { %v3711_v20 = vcombine.high %v1286_v12, %v1290_v13  ;;  %v3710_v23 = vcombine.low %v1286_v12, %v1290_v13  ;;  %v3584_v24 = vcombine.low %v1159_v14, %v1163_v15  ;;  %v1108_v12 = vld [vmem:[#allocation8 + $0x1b8] sm:$0xff] }
 0x195   :  { %2759 = vmatpush1.bf16.msra.mxu1 %v3646_v21  ;;  %2800 = vmatpush1.bf16.msra.mxu0 %v3520_v28  ;;  %v3585_v21 = vcombine.high %v1159_v14, %v1163_v15  ;;  %v1278_v28 = vld [vmem:[#allocation8 + $0x708] sm:$0xff] }
 0x196   :  { %2760 = vmatprep.subr.bf16.mxu1 %v3639_v29  ;;  %2801 = vmatprep.subr.bf16.mxu0 %v3513_v31  ;;  %v1282_v29 = vld [vmem:[#allocation8 + $0x728] sm:$0xff]  ;;  %v1151_v31 = vld [vmem:[#allocation8 + $0x310] sm:$0xff] }
 0x197   :  { %v3703_v25 = vcombine.high %v1278_v28, %v1282_v29  ;;  %v3702_v34 = vcombine.low %v1278_v28, %v1282_v29  ;;  %v3576_v35 = vcombine.low %v1151_v31, %v1155_v22  ;;  %v1100_v28 = vld [vmem:[#allocation8 + $0x178] sm:$0xff] }
 0x199   :  { %2761 = vmatpush1.bf16.msra.mxu1 %v3638_v26  ;;  %2802 = vmatpush1.bf16.msra.mxu0 %v3512_v27  ;;  %v3577_v26 = vcombine.high %v1151_v31, %v1155_v22  ;;  %v1270_v27 = vld [vmem:[#allocation8 + $0x6c8] sm:$0xff] }
 0x19a   :  { %2762 = vmatprep.subr.bf16.mxu1 %v3631_v30  ;;  %2803 = vmatprep.subr.bf16.mxu0 %v3505_v32  ;;  %v1274_v30 = vld [vmem:[#allocation8 + $0x6e8] sm:$0xff]  ;;  %v1143_v32 = vld [vmem:[#allocation8 + $0x2d0] sm:$0xff] }
 0x19b   :  { %v3695_v37 = vcombine.high %v1270_v27, %v1274_v30  ;;  %v3694_v44 = vcombine.low %v1270_v27, %v1274_v30  ;;  %v3568_v45 = vcombine.low %v1143_v32, %v1147_v33  ;;  %v1092_v27 = vld [vmem:[#allocation8 + $0x138] sm:$0xff] }
 0x19d   :  { %2763 = vmatpush1.bf16.msra.mxu1 %v3630_v38  ;;  %2804 = vmatpush1.bf16.msra.mxu0 %v3504_v39  ;;  %v3569_v38 = vcombine.high %v1143_v32, %v1147_v33  ;;  %v1262_v39 = vld [vmem:[#allocation8 + $0x688] sm:$0xff] }
 0x19e   :  { %2764 = vmatprep.subr.bf16.mxu1 %v3623_v17  ;;  %2805 = vmatprep.subr.bf16.mxu0 %v3497_v41  ;;  %v1266_v17 = vld [vmem:[#allocation8 + $0x6a8] sm:$0xff]  ;;  %v1135_v41 = vld [vmem:[#allocation8 + $0x290] sm:$0xff] }
 0x19f   :  { %v3687_v46 = vcombine.high %v1262_v39, %v1266_v17  ;;  %v3686_v54 = vcombine.low %v1262_v39, %v1266_v17  ;;  %v3560_v55 = vcombine.low %v1135_v41, %v1139_v42 }
 0x1a1   :  { %2765 = vmatpush1.bf16.msra.mxu1 %v3622_v47  ;;  %2806 = vmatpush1.bf16.msra.mxu0 %v3496_v50  ;;  %v3561_v47 = vcombine.high %v1135_v41, %v1139_v42  ;;  %v1254_v50 = vld [vmem:[#allocation8 + $0x648] sm:$0xff] }
 0x1a2   :  { %2766 = vmatprep.subr.bf16.mxu1 %v3615_v51  ;;  %2807 = vmatprep.subr.bf16.mxu0 %v3489_v52  ;;  %v1258_v51 = vld [vmem:[#allocation8 + $0x668] sm:$0xff]  ;;  %v1127_v52 = vld [vmem:[#allocation8 + $0x250] sm:$0xff] }
 0x1a3   :  { %v3679_v56 = vcombine.high %v1254_v50, %v1258_v51  ;;  %v3678_v62 = vcombine.low %v1254_v50, %v1258_v51  ;;  %v3552_v63 = vcombine.low %v1127_v52, %v1131_v53 }
 0x1a5   :  { %2767 = vmatpush1.bf16.msra.mxu1 %v3614_v57  ;;  %2808 = vmatpush1.bf16.msra.mxu0 %v3488_v58  ;;  %v3553_v57 = vcombine.high %v1127_v52, %v1131_v53  ;;  %v1246_v58 = vld [vmem:[#allocation8 + $0x608] sm:$0xff] }
 0x1a6   :  { %2768 = vmatprep.subr.bf16.mxu1 %v3607_v59  ;;  %2809 = vmatprep.subr.bf16.mxu0 %v3481_v60  ;;  %v1250_v59 = vld [vmem:[#allocation8 + $0x628] sm:$0xff]  ;;  %v1119_v60 = vld [vmem:[#allocation8 + $0x210] sm:$0xff] }
 0x1a7   :  { %v3671_v36 = vcombine.high %v1246_v58, %v1250_v59  ;;  %v3670_v5 = vcombine.low %v1246_v58, %v1250_v59  ;;  %v3544_v6 = vcombine.low %v1119_v60, %v1123_v61 }
 0x1a9   :  { %2769 = vmatpush1.bf16.msra.mxu1 %v3606_v16  ;;  %2810 = vmatpush1.bf16.msra.mxu0 %v3480_v40  ;;  %v3545_v16 = vcombine.high %v1119_v60, %v1123_v61  ;;  %v1239_v40 = vld [vmem:[#allocation8 + $0x5d0] sm:$0xff] }
 0x1aa   :  { %2770 = vmatprep.subr.bf16.mxu1 %v3727_v0  ;;  %2811 = vmatprep.subr.bf16.mxu0 %v3601_v1  ;;  %v1243_v0 = vld [vmem:[#allocation8 + $0x5f0] sm:$0xff]  ;;  %v1112_v1 = vld [vmem:[#allocation8 + $0x1d8] sm:$0xff] }
 0x1ab   :  { %v3665_v7 = vcombine.high %v1239_v40, %v1243_v0  ;;  %v3664_v13 = vcombine.low %v1239_v40, %v1243_v0  ;;  %v3538_v14 = vcombine.low %v1112_v1, %v1116_v3 }
 0x1ad   :  { %2771 = vmatpush2.bf16.msra.mxu1 %v3726_v8  ;;  %2812 = vmatpush2.bf16.msra.mxu0 %v3600_v9  ;;  %v3539_v8 = vcombine.high %v1112_v1, %v1116_v3  ;;  %v1231_v9 = vld [vmem:[#allocation8 + $0x590] sm:$0xff] }
 0x1ae   :  { %2772 = vmatprep.subr.bf16.mxu1 %v3719_v10  ;;  %2813 = vmatprep.subr.bf16.mxu0 %v3593_v11  ;;  %v1235_v10 = vld [vmem:[#allocation8 + $0x5b0] sm:$0xff]  ;;  %v1104_v11 = vld [vmem:[#allocation8 + $0x198] sm:$0xff] }
 0x1af   :  { %v3657_v15 = vcombine.high %v1231_v9, %v1235_v10  ;;  %v3656_v29 = vcombine.low %v1231_v9, %v1235_v10  ;;  %v3530_v31 = vcombine.low %v1104_v11, %v1108_v12 }
 0x1b1   :  { %2773 = vmatpush2.bf16.msra.mxu1 %v3718_v18  ;;  %2814 = vmatpush2.bf16.msra.mxu0 %v3592_v19  ;;  %v3531_v18 = vcombine.high %v1104_v11, %v1108_v12  ;;  %v1223_v19 = vld [vmem:[#allocation8 + $0x550] sm:$0xff] }
 0x1b2   :  { %2774 = vmatprep.subr.bf16.mxu1 %v3711_v20  ;;  %2815 = vmatprep.subr.bf16.mxu0 %v3585_v21  ;;  %v1227_v20 = vld [vmem:[#allocation8 + $0x570] sm:$0xff]  ;;  %v1096_v21 = vld [vmem:[#allocation8 + $0x158] sm:$0xff] }
 0x1b3   :  { %v3649_v22 = vcombine.high %v1223_v19, %v1227_v20  ;;  %v3648_v30 = vcombine.low %v1223_v19, %v1227_v20  ;;  %v3522_v32 = vcombine.low %v1096_v21, %v1100_v28 }
 0x1b5   :  { %2775 = vmatpush2.bf16.msra.mxu1 %v3710_v23  ;;  %2816 = vmatpush2.bf16.msra.mxu0 %v3584_v24  ;;  %v3523_v23 = vcombine.high %v1096_v21, %v1100_v28  ;;  %v1215_v24 = vld [vmem:[#allocation8 + $0x510] sm:$0xff] }
 0x1b6   :  { %2776 = vmatprep.subr.bf16.mxu1 %v3703_v25  ;;  %2817 = vmatprep.subr.bf16.mxu0 %v3577_v26  ;;  %v1219_v25 = vld [vmem:[#allocation8 + $0x530] sm:$0xff]  ;;  %v1088_v26 = vld [vmem:[#allocation8 + $0x118] sm:$0xff] }
 0x1b7   :  { %v3641_v33 = vcombine.high %v1215_v24, %v1219_v25  ;;  %v3640_v39 = vcombine.low %v1215_v24, %v1219_v25  ;;  %v3514_v17 = vcombine.low %v1088_v26, %v1092_v27 }
 0x1b9   :  { %2777 = vmatpush2.bf16.msra.mxu1 %v3702_v34  ;;  %2818 = vmatpush2.bf16.msra.mxu0 %v3576_v35  ;;  %v3515_v34 = vcombine.high %v1088_v26, %v1092_v27  ;;  %v1207_v35 = vld [vmem:[#allocation8 + $0x4d0] sm:$0xff] }
 0x1ba   :  { %2778 = vmatprep.subr.bf16.mxu1 %v3695_v37  ;;  %2819 = vmatprep.subr.bf16.mxu0 %v3569_v38  ;;  %v1211_v37 = vld [vmem:[#allocation8 + $0x4f0] sm:$0xff]  ;;  %v1084_v38 = vld [vmem:[#allocation8 + $0xf8] sm:$0xff] }
 0x1bb   :  { %v3633_v41 = vcombine.high %v1207_v35, %v1211_v37  ;;  %v3632_v50 = vcombine.low %v1207_v35, %v1211_v37 }
 0x1bd   :  { %2779 = vmatpush2.bf16.msra.mxu1 %v3694_v44  ;;  %2820 = vmatpush2.bf16.msra.mxu0 %v3568_v45  ;;  %v1199_v44 = vld [vmem:[#allocation8 + $0x490] sm:$0xff] }
 0x1be   :  { %2780 = vmatprep.subr.bf16.mxu1 %v3687_v46  ;;  %2821 = vmatprep.subr.bf16.mxu0 %v3561_v47  ;;  %v1203_v45 = vld [vmem:[#allocation8 + $0x4b0] sm:$0xff]  ;;  %v1072_v46 = vld [vmem:[#allocation8 + $0x98] sm:$0xff] }
 0x1bf   :  { %v1076_v47 = vld [vmem:[#allocation8 + $0xb8] sm:$0xff]  ;;  %v3625_v52 = vcombine.high %v1199_v44, %v1203_v45  ;;  %v3624_v58 = vcombine.low %v1199_v44, %v1203_v45 }
 0x1c0   :  { %v3499_v53 = vcombine.high %v1072_v46, %v1076_v47  ;;  %v3498_v59 = vcombine.low %v1072_v46, %v1076_v47 }
 0x1c1   :  { %2781 = vmatpush2.bf16.msra.mxu1 %v3686_v54  ;;  %2822 = vmatpush2.bf16.msra.mxu0 %v3560_v55  ;;  %v1191_v54 = vld [vmem:[#allocation8 + $0x450] sm:$0xff] }
 0x1c2   :  { %2782 = vmatprep.subr.bf16.mxu1 %v3679_v56  ;;  %2823 = vmatprep.subr.bf16.mxu0 %v3553_v57  ;;  %v1195_v55 = vld [vmem:[#allocation8 + $0x470] sm:$0xff]  ;;  %v1064_v56 = vld [vmem:[#allocation8 + $0x58] sm:$0xff] }
 0x1c3   :  { %v1068_v57 = vld [vmem:[#allocation8 + $0x78] sm:$0xff]  ;;  %v3617_v60 = vcombine.high %v1191_v54, %v1195_v55  ;;  %v3616_v40 = vcombine.low %v1191_v54, %v1195_v55 }
 0x1c4   :  { %v3491_v61 = vcombine.high %v1064_v56, %v1068_v57  ;;  %v3490_v0 = vcombine.low %v1064_v56, %v1068_v57 }
 0x1c5   :  { %2783 = vmatpush2.bf16.msra.mxu1 %v3678_v62  ;;  %2824 = vmatpush2.bf16.msra.mxu0 %v3552_v63  ;;  %v1183_v62 = vld [vmem:[#allocation8 + $0x410] sm:$0xff] }
 0x1c6   :  { %2784 = vmatprep.subr.bf16.mxu1 %v3671_v36  ;;  %2825 = vmatprep.subr.bf16.mxu0 %v3545_v16  ;;  %v1187_v63 = vld [vmem:[#allocation8 + $0x430] sm:$0xff]  ;;  %v1056_v36 = vld [vmem:[#allocation8 + $0x18] sm:$0xff] }
 0x1c7   :  { %v1060_v16 = vld [vmem:[#allocation8 + $0x38] sm:$0xff]  ;;  %v3609_v1 = vcombine.high %v1183_v62, %v1187_v63  ;;  %v3608_v9 = vcombine.low %v1183_v62, %v1187_v63 }
 0x1c8   :  { %v3483_v3 = vcombine.high %v1056_v36, %v1060_v16  ;;  %v3482_v10 = vcombine.low %v1056_v36, %v1060_v16 }
 0x1c9   :  { %2785 = vmatpush2.bf16.msra.mxu1 %v3670_v5  ;;  %2826 = vmatpush2.bf16.msra.mxu0 %v3544_v6  ;;  %v1303_v5 = vld [vmem:[#allocation8 + $0x7d0] sm:$0xff] }
 0x1ca   :  { %2836 = vmatprep.subr.bf16.mxu1 %v3665_v7  ;;  %2877 = vmatprep.subr.bf16.mxu0 %v3539_v8  ;;  %v1307_v6 = vld [vmem:[#allocation8 + $0x7f0] sm:$0xff]  ;;  %v1176_v7 = vld [vmem:[#allocation8 + $0x3d8] sm:$0xff] }
 0x1cb   :  { %v1180_v8 = vld [vmem:[#allocation8 + $0x3f8] sm:$0xff]  ;;  %v3729_v11 = vcombine.high %v1303_v5, %v1307_v6  ;;  %v3728_v19 = vcombine.low %v1303_v5, %v1307_v6 }
 0x1cc   :  { %2787 = vmatmul.mubr.bf16.vlgmr.msra.gmra.mxu1 %v4226_v4  ;;  %2828 = vmatmul.mubr.bf16.vlgmr.msra.gmra.mxu0 %v4216_v49  ;;  %v3603_v12 = vcombine.high %v1176_v7, %v1180_v8  ;;  %v3602_v20 = vcombine.low %v1176_v7, %v1180_v8 }
 0x1cd   :  { %2837 = vmatpush1.bf16.msra.mxu1 %v3664_v13  ;;  %2868 = vmatprep.mubr.bf16.mxu1 %v4224_v2  ;;  %v1295_v13 = vld [vmem:[#allocation8 + $0x790] sm:$0xff] }
 0x1ce   :  { %2878 = vmatpush1.bf16.msra.mxu0 %v3538_v14  ;;  %2909 = vmatprep.mubr.bf16.mxu0 %v4214_v48  ;;  %v1080_v48 = vld [vmem:[#allocation8 + $0xd8] sm:$0xff]  ;;  %v1299_v14 = vld [vmem:[#allocation8 + $0x7b0] sm:$0xff] }
 0x1cf   :  { %2838 = vmatprep.subr.bf16.mxu1 %v3657_v15  ;;  %2879 = vmatprep.subr.bf16.mxu0 %v3531_v18  ;;  %v3507_v42 = vcombine.high %v1080_v48, %v1084_v38  ;;  %v3506_v51 = vcombine.low %v1080_v48, %v1084_v38  ;;  %v1168_v15 = vld [vmem:[#allocation8 + $0x398] sm:$0xff]  ;;  %v3721_v21 = vcombine.high %v1295_v13, %v1299_v14 }
 0x1d0   :  { %v1172_v18 = vld [vmem:[#allocation8 + $0x3b8] sm:$0xff]  ;;  %v3720_v24 = vcombine.low %v1295_v13, %v1299_v14 }
 0x1d1   :  { %2839 = vmatpush1.bf16.msra.mxu1 %v3656_v29  ;;  %v3595_v28 = vcombine.high %v1168_v15, %v1172_v18  ;;  %v1287_v29 = vld [vmem:[#allocation8 + $0x750] sm:$0xff]  ;;  %v3594_v25 = vcombine.low %v1168_v15, %v1172_v18  ;;  %v1232_v14 = vld [vmem:[#allocation8 + $0x598] sm:$0xff] }
 0x1d2   :  { %2880 = vmatpush1.bf16.msra.mxu0 %v3530_v31  ;;  %2840 = vmatprep.subr.bf16.mxu1 %v3649_v22  ;;  %v1291_v31 = vld [vmem:[#allocation8 + $0x770] sm:$0xff]  ;;  %v1160_v22 = vld [vmem:[#allocation8 + $0x358] sm:$0xff] }
 0x1d3   :  { %2881 = vmatprep.subr.bf16.mxu0 %v3523_v23  ;;  %v1164_v23 = vld [vmem:[#allocation8 + $0x378] sm:$0xff]  ;;  %v3713_v26 = vcombine.high %v1287_v29, %v1291_v31  ;;  %v3712_v35 = vcombine.low %v1287_v29, %v1291_v31 }
 0x1d4   :  { %v3587_v27 = vcombine.high %v1160_v22, %v1164_v23  ;;  %v3586_v37 = vcombine.low %v1160_v22, %v1164_v23  ;;  %v1236_v15 = vld [vmem:[#allocation8 + $0x5b8] sm:$0xff] }
 0x1d5   :  { %2841 = vmatpush1.bf16.msra.mxu1 %v3648_v30  ;;  %v1279_v30 = vld [vmem:[#allocation8 + $0x710] sm:$0xff]  ;;  %v3658_v29 = vcombine.low %v1232_v14, %v1236_v15  ;;  %v1216_v23 = vld [vmem:[#allocation8 + $0x518] sm:$0xff] }
 0x1d6   :  { %2882 = vmatpush1.bf16.msra.mxu0 %v3522_v32  ;;  %2842 = vmatprep.subr.bf16.mxu1 %v3641_v33  ;;  %v1283_v32 = vld [vmem:[#allocation8 + $0x730] sm:$0xff]  ;;  %v1152_v33 = vld [vmem:[#allocation8 + $0x318] sm:$0xff] }
 0x1d7   :  { %2883 = vmatprep.subr.bf16.mxu0 %v3515_v34  ;;  %v1156_v34 = vld [vmem:[#allocation8 + $0x338] sm:$0xff]  ;;  %v3705_v48 = vcombine.high %v1279_v30, %v1283_v32  ;;  %v3704_v44 = vcombine.low %v1279_v30, %v1283_v32 }
 0x1d8   :  { %v3579_v38 = vcombine.high %v1152_v33, %v1156_v34  ;;  %v3578_v45 = vcombine.low %v1152_v33, %v1156_v34  ;;  %v1208_v32 = vld [vmem:[#allocation8 + $0x4d8] sm:$0xff] }
 0x1d9   :  { %2843 = vmatpush1.bf16.msra.mxu1 %v3640_v39  ;;  %v1271_v39 = vld [vmem:[#allocation8 + $0x6d0] sm:$0xff]  ;;  %v1212_v33 = vld [vmem:[#allocation8 + $0x4f8] sm:$0xff] }
 0x1da   :  { %2884 = vmatpush1.bf16.msra.mxu0 %v3514_v17  ;;  %2844 = vmatprep.subr.bf16.mxu1 %v3633_v41  ;;  %v1275_v17 = vld [vmem:[#allocation8 + $0x6f0] sm:$0xff]  ;;  %v1144_v41 = vld [vmem:[#allocation8 + $0x2d8] sm:$0xff]  ;;  %v3635_v34 = vcombine.high %v1208_v32, %v1212_v33 }
 0x1db   :  { %2885 = vmatprep.subr.bf16.mxu0 %v3507_v42  ;;  %v1148_v42 = vld [vmem:[#allocation8 + $0x2f8] sm:$0xff]  ;;  %v3697_v46 = vcombine.high %v1271_v39, %v1275_v17  ;;  %v3696_v54 = vcombine.low %v1271_v39, %v1275_v17 }
 0x1dc   :  { %v3571_v47 = vcombine.high %v1144_v41, %v1148_v42  ;;  %v3570_v55 = vcombine.low %v1144_v41, %v1148_v42  ;;  %v1196_v39 = vld [vmem:[#allocation8 + $0x478] sm:$0xff] }
 0x1dd   :  { %2845 = vmatpush1.bf16.msra.mxu1 %v3632_v50  ;;  %v1263_v50 = vld [vmem:[#allocation8 + $0x690] sm:$0xff]  ;;  %v1184_v42 = vld [vmem:[#allocation8 + $0x418] sm:$0xff] }
 0x1de   :  { %2886 = vmatpush1.bf16.msra.mxu0 %v3506_v51  ;;  %2846 = vmatprep.subr.bf16.mxu1 %v3625_v52  ;;  %v1267_v51 = vld [vmem:[#allocation8 + $0x6b0] sm:$0xff]  ;;  %v1136_v52 = vld [vmem:[#allocation8 + $0x298] sm:$0xff] }
 0x1df   :  { %2887 = vmatprep.subr.bf16.mxu0 %v3499_v53  ;;  %v1140_v53 = vld [vmem:[#allocation8 + $0x2b8] sm:$0xff]  ;;  %v3689_v56 = vcombine.high %v1263_v50, %v1267_v51  ;;  %v3688_v62 = vcombine.low %v1263_v50, %v1267_v51 }
 0x1e0   :  { %v3563_v57 = vcombine.high %v1136_v52, %v1140_v53  ;;  %v3562_v63 = vcombine.low %v1136_v52, %v1140_v53  ;;  %v1308_v50 = vld [vmem:[#allocation8 + $0x7f8] sm:$0xff] }
 0x1e1   :  { %2847 = vmatpush1.bf16.msra.mxu1 %v3624_v58  ;;  %v1255_v58 = vld [vmem:[#allocation8 + $0x650] sm:$0xff]  ;;  %v1296_v53 = vld [vmem:[#allocation8 + $0x798] sm:$0xff] }
 0x1e2   :  { %2888 = vmatpush1.bf16.msra.mxu0 %v3498_v59  ;;  %2848 = vmatprep.subr.bf16.mxu1 %v3617_v60  ;;  %v1259_v59 = vld [vmem:[#allocation8 + $0x670] sm:$0xff]  ;;  %v1128_v60 = vld [vmem:[#allocation8 + $0x258] sm:$0xff] }
 0x1e3   :  { %2889 = vmatprep.subr.bf16.mxu0 %v3491_v61  ;;  %v1132_v61 = vld [vmem:[#allocation8 + $0x278] sm:$0xff]  ;;  %v3681_v36 = vcombine.high %v1255_v58, %v1259_v59  ;;  %v3680_v5 = vcombine.low %v1255_v58, %v1259_v59 }
 0x1e4   :  { %v3555_v16 = vcombine.high %v1128_v60, %v1132_v61  ;;  %v3554_v6 = vcombine.low %v1128_v60, %v1132_v61  ;;  %v1292_v58 = vld [vmem:[#allocation8 + $0x778] sm:$0xff] }
 0x1e5   :  { %2849 = vmatpush1.bf16.msra.mxu1 %v3616_v40  ;;  %v1247_v40 = vld [vmem:[#allocation8 + $0x610] sm:$0xff]  ;;  %v1280_v61 = vld [vmem:[#allocation8 + $0x718] sm:$0xff] }
 0x1e6   :  { %2890 = vmatpush1.bf16.msra.mxu0 %v3490_v0  ;;  %2850 = vmatprep.subr.bf16.mxu1 %v3609_v1  ;;  %v1251_v0 = vld [vmem:[#allocation8 + $0x630] sm:$0xff]  ;;  %v1120_v1 = vld [vmem:[#allocation8 + $0x218] sm:$0xff] }
 0x1e7   :  { %2891 = vmatprep.subr.bf16.mxu0 %v3483_v3  ;;  %v1124_v3 = vld [vmem:[#allocation8 + $0x238] sm:$0xff]  ;;  %v3673_v7 = vcombine.high %v1247_v40, %v1251_v0 }
 0x1e8   :  { %v3547_v8 = vcombine.high %v1120_v1, %v1124_v3 }
 0x1e9   :  { %2851 = vmatpush1.bf16.msra.mxu1 %v3608_v9  ;;  %v1240_v9 = vld [vmem:[#allocation8 + $0x5d8] sm:$0xff] }
 0x1ea   :  { %2892 = vmatpush1.bf16.msra.mxu0 %v3482_v10  ;;  %2852 = vmatprep.subr.bf16.mxu1 %v3729_v11  ;;  %v1244_v10 = vld [vmem:[#allocation8 + $0x5f8] sm:$0xff]  ;;  %v3672_v11 = vcombine.low %v1247_v40, %v1251_v0 }
 0x1eb   :  { %2893 = vmatprep.subr.bf16.mxu0 %v3603_v12  ;;  %v3546_v12 = vcombine.low %v1120_v1, %v1124_v3  ;;  %v3667_v13 = vcombine.high %v1240_v9, %v1244_v10  ;;  %v3666_v18 = vcombine.low %v1240_v9, %v1244_v10  ;;  %v1276_v40 = vld [vmem:[#allocation8 + $0x6f8] sm:$0xff] }
 0x1ec   :  { %v1264_v3 = vld [vmem:[#allocation8 + $0x698] sm:$0xff] }
 0x1ed   :  { %2853 = vmatpush2.bf16.msra.mxu1 %v3728_v19  ;;  %v3659_v19 = vcombine.high %v1232_v14, %v1236_v15  ;;  %v1260_v9 = vld [vmem:[#allocation8 + $0x678] sm:$0xff] }
 0x1ee   :  { %2894 = vmatpush2.bf16.msra.mxu0 %v3602_v20  ;;  %2854 = vmatprep.subr.bf16.mxu1 %v3721_v21  ;;  %v1224_v20 = vld [vmem:[#allocation8 + $0x558] sm:$0xff] }
 0x1ef   :  { %2895 = vmatprep.subr.bf16.mxu0 %v3595_v28  ;;  %v1228_v21 = vld [vmem:[#allocation8 + $0x578] sm:$0xff] }
 0x1f0   :  { %v3651_v22 = vcombine.high %v1224_v20, %v1228_v21 }
 0x1f1   :  { %2855 = vmatpush2.bf16.msra.mxu1 %v3720_v24  ;;  %v1220_v24 = vld [vmem:[#allocation8 + $0x538] sm:$0xff] }
 0x1f2   :  { %2896 = vmatpush2.bf16.msra.mxu0 %v3594_v25  ;;  %2856 = vmatprep.subr.bf16.mxu1 %v3713_v26  ;;  %v3650_v26 = vcombine.low %v1224_v20, %v1228_v21  ;;  %v3643_v30 = vcombine.high %v1216_v23, %v1220_v24  ;;  %v1317_v20 = vsub.s32 1, %v4187_v43 }
 0x1f3   :  { %2897 = vmatprep.subr.bf16.mxu0 %v3587_v27 }
 0x1f5   :  { %2857 = vmatpush2.bf16.msra.mxu1 %v3712_v35  ;;  %v1200_v35 = vld [vmem:[#allocation8 + $0x498] sm:$0xff] }
 0x1f6   :  { %2898 = vmatpush2.bf16.msra.mxu0 %v3586_v37  ;;  %2858 = vmatprep.subr.bf16.mxu1 %v3705_v48  ;;  %v3634_v37 = vcombine.low %v1208_v32, %v1212_v33 }
 0x1f7   :  { %2899 = vmatprep.subr.bf16.mxu0 %v3579_v38  ;;  %v1192_v38 = vld [vmem:[#allocation8 + $0x458] sm:$0xff] }
 0x1f8   :  { %v3619_v41 = vcombine.high %v1192_v38, %v1196_v39 }
 0x1f9   :  { %2859 = vmatpush2.bf16.msra.mxu1 %v3704_v44  ;;  %v1188_v44 = vld [vmem:[#allocation8 + $0x438] sm:$0xff] }
 0x1fa   :  { %2900 = vmatpush2.bf16.msra.mxu0 %v3578_v45  ;;  %2860 = vmatprep.subr.bf16.mxu1 %v3697_v46  ;;  %v3618_v45 = vcombine.low %v1192_v38, %v1196_v39  ;;  %v3611_v46 = vcombine.high %v1184_v42, %v1188_v44  ;;  %v3610_v51 = vcombine.low %v1184_v42, %v1188_v44  ;;  %v3972_v44 = vld [vmem:[#allocation11 + $0x70] ss:$8 sps:$4 sm:$0xff]  }
 0x1fb   :  { %2901 = vmatprep.subr.bf16.mxu0 %v3571_v47  ;;  %v1304_v47 = vld [vmem:[#allocation8 + $0x7d8] sm:$0xff] }
 0x1fc   :  { %v3731_v52 = vcombine.high %v1304_v47, %v1308_v50 }
 0x1fd   :  { %2861 = vmatpush2.bf16.msra.mxu1 %v3696_v54  ;;  %v1300_v54 = vld [vmem:[#allocation8 + $0x7b8] sm:$0xff] }
 0x1fe   :  { %2902 = vmatpush2.bf16.msra.mxu0 %v3570_v55  ;;  %2862 = vmatprep.subr.bf16.mxu1 %v3689_v56  ;;  %v3730_v55 = vcombine.low %v1304_v47, %v1308_v50  ;;  %v3723_v56 = vcombine.high %v1296_v53, %v1300_v54  ;;  %v3722_v59 = vcombine.low %v1296_v53, %v1300_v54  ;;  %v3975_v47 = vld [vmem:[#allocation11 + $0x60] ss:$8 sps:$4 sm:$0xff]   ;;  %v3980_v50 = vld [vmem:[#allocation11 + $0x54] ss:$8 sps:$4 sm:$0xff]   ;;  %v1325_v53 = vsub.s32 3, %v4187_v43 }
 0x1ff   :  { %2903 = vmatprep.subr.bf16.mxu0 %v3563_v57  ;;  %v1288_v57 = vld [vmem:[#allocation8 + $0x758] sm:$0xff] }
 0x200   :  { %v3715_v60 = vcombine.high %v1288_v57, %v1292_v58 }
 0x201   :  { %2863 = vmatpush2.bf16.msra.mxu1 %v3688_v62  ;;  %v1284_v62 = vld [vmem:[#allocation8 + $0x738] sm:$0xff] }
 0x202   :  { %2904 = vmatpush2.bf16.msra.mxu0 %v3562_v63  ;;  %2864 = vmatprep.subr.bf16.mxu1 %v3681_v36  ;;  %v3714_v63 = vcombine.low %v1288_v57, %v1292_v58  ;;  %v3707_v36 = vcombine.high %v1280_v61, %v1284_v62  ;;  %v3706_v0 = vcombine.low %v1280_v61, %v1284_v62  ;;  %v3981_v62 = vld [vmem:[#allocation11 + $0x40] ss:$8 sps:$4 sm:$0xff]  }
 0x203   :  { %2905 = vmatprep.subr.bf16.mxu0 %v3555_v16  ;;  %v1272_v16 = vld [vmem:[#allocation8 + $0x6d8] sm:$0xff] }
 0x204   :  { %v3699_v1 = vcombine.high %v1272_v16, %v1276_v40 }
 0x205   :  { %2865 = vmatpush2.bf16.msra.mxu1 %v3680_v5  ;;  %v1268_v5 = vld [vmem:[#allocation8 + $0x6b8] sm:$0xff] }
 0x206   :  { %2906 = vmatpush2.bf16.msra.mxu0 %v3554_v6  ;;  %2866 = vmatprep.subr.bf16.mxu1 %v3673_v7  ;;  %v3698_v6 = vcombine.low %v1272_v16, %v1276_v40  ;;  %v3691_v7 = vcombine.high %v1264_v3, %v1268_v5  ;;  %v3690_v10 = vcombine.low %v1264_v3, %v1268_v5  ;;  %v3986_v3 = vld [vmem:[#allocation11 + $0x34] ss:$8 sps:$4 sm:$0xff]  }
 0x207   :  { %2907 = vmatprep.subr.bf16.mxu0 %v3547_v8  ;;  %v1256_v8 = vld [vmem:[#allocation8 + $0x658] sm:$0xff] }
 0x208   :  { %v3682_v14 = vcombine.low %v1256_v8, %v1260_v9 }
 0x209   :  { %2867 = vmatpush2.bf16.msra.mxu1 %v3672_v11  ;;  %v3683_v11 = vcombine.high %v1256_v8, %v1260_v9 }
 0x20a   :  { %2908 = vmatpush2.bf16.msra.mxu0 %v3546_v12  ;;  %2918 = vmatprep.subr.bf16.mxu1 %v3667_v13  ;;  %v1248_v12 = vld [vmem:[#allocation8 + $0x618] sm:$0xff] }
 0x20b   :  { %v1252_v13 = vld [vmem:[#allocation8 + $0x638] sm:$0xff] }
 0x20c   :  { %2869 = vmatmul.mubr.bf16.vlgmr.msra.gmra.mxu1 %v4226_v4  ;;  %v4241_v28 = vpop.f32.mrf.mxu0  ;;  %v3675_v15 = vcombine.high %v1248_v12, %v1252_v13  ;;  %v3674_v21 = vcombine.low %v1248_v12, %v1252_v13  ;;  %v3989_v12 = vld [vmem:[#allocation11 + $0x24] ss:$8 sps:$4 sm:$0xff]  }
 0x20d   :  { %2910 = vmatmul.mubr.bf16.vlgmr.msra.gmra.mxu0 %v4216_v49  ;;  %2919 = vmatpush1.bf16.msra.mxu1 %v3666_v18  ;;  %v3642_v49 = vcombine.low %v1216_v23, %v1220_v24  ;;  %v1313_v18 = vsub.s32 0, %v4187_v43 }
 0x20e   :  { %2950 = vmatprep.mubr.bf16.mxu1 %v4224_v2  ;;  %v4245_v31 = vpop.f32.mrf.mxu0  ;;  %2920 = vmatprep.subr.bf16.mxu1 %v3659_v19  ;;  %v1204_v2 = vld [vmem:[#allocation8 + $0x4b8] sm:$0xff]  ;;  %v4248_v19 = vld [vmem:[#allocation9] sm:$0xff] }
 0x20f   :  { %v3627_v48 = vcombine.high %v1200_v35, %v1204_v2  ;;  %v3626_v17 = vcombine.low %v1200_v35, %v1204_v2  ;;  %v1314_v23 = vrot.slane %v4248_v19, %v1313_v18  ;;  %v1318_v24 = vrot.slane %v4248_v19, %v1317_v20  ;;  %v3992_v18 = vld [vmem:[#allocation11 + $0x14] ss:$8 sps:$4 sm:$0xff]   ;;  %v3995_v20 = vld [vmem:[#allocation11 + $0x4] ss:$8 sps:$4 sm:$0xff]  }
 0x210   :  { %v2669_v25 = vpop.f32.mrf.mxu0 }
 0x211   :  { %2921 = vmatpush1.bf16.msra.mxu1 %v3658_v29  ;;  %v4136_v29 = vmov 1966171168   ;;  %v2668_v32 = vadd.f32 %v4245_v31, %v1318_v24 }
 0x212   :  { %v2670_v27 = vpop.f32.mrf.mxu0  ;;  %2922 = vmatprep.subr.bf16.mxu1 %v3651_v22  ;;  %v2969_v22 = vunpack.c.l.s4 %v4136_v29  ;;  %v3993_v29 = vld [vmem:[#allocation11] ss:$8 sps:$4 sm:$0xff]  }
 0x214   :  { %v2970_v25 = vunpack.c.0.s8 %v2969_v22  ;;  %v1329_v22 = vsub.s32 4, %v4187_v43 }
 0x215   :  { %2923 = vmatpush1.bf16.msra.mxu1 %v3650_v26  ;;  %v2666_v26 = vadd.f32 %v4241_v28, %v1314_v23  ;;  %v1333_v23 = vsub.s32 5, %v4187_v43 }
 0x216   :  { %2924 = vmatprep.subr.bf16.mxu1 %v3643_v30  ;;  %v1330_v24 = vrot.slane %v4248_v19, %v1329_v22 }
 0x219   :  { %2925 = vmatpush1.bf16.msra.mxu1 %v3642_v49  ;;  %v4257_v49 = vsub.s32 %v2970_v25, %v4187_v43  ;;  %v1334_v25 = vrot.slane %v4248_v19, %v1333_v23 }
 0x21a   :  { %2926 = vmatprep.subr.bf16.mxu1 %v3635_v34 }
 0x21d   :  { %2927 = vmatpush1.bf16.msra.mxu1 %v3634_v37 }
 0x21e   :  { %2928 = vmatprep.subr.bf16.mxu1 %v3627_v48 }
 0x221   :  { %2929 = vmatpush1.bf16.msra.mxu1 %v3626_v17 }
 0x222   :  { %2930 = vmatprep.subr.bf16.mxu1 %v3619_v41 }
 0x225   :  { %2931 = vmatpush1.bf16.msra.mxu1 %v3618_v45  ;;  %v3974_v45 = vld [vmem:[#allocation11 + $0x74] ss:$8 sps:$4 sm:$0xff]  }
 0x226   :  { %2932 = vmatprep.subr.bf16.mxu1 %v3611_v46  ;;  %v3977_v46 = vld [vmem:[#allocation11 + $0x64] ss:$8 sps:$4 sm:$0xff]   ;;  %3282 = vmatprep.subr.bf16.mxu0 %v3974_v45  ;;  %v1341_v45 = vsub.s32 7, %v4187_v43 }
 0x227   :  { %3283 = vmatpush1.bf16.msra.mxu0 %v3972_v44  ;;  %v1337_v44 = vsub.s32 6, %v4187_v43 }
 0x228   :  { %3284 = vmatprep.subr.bf16.mxu0 %v3977_v46 }
 0x229   :  { %2933 = vmatpush1.bf16.msra.mxu1 %v3610_v51  ;;  %v3978_v51 = vld [vmem:[#allocation11 + $0x50] ss:$8 sps:$4 sm:$0xff]   ;;  %v1338_v46 = vrot.slane %v4248_v19, %v1337_v44 }
 0x22a   :  { %2934 = vmatprep.subr.bf16.mxu1 %v3731_v52  ;;  %v1321_v52 = vsub.s32 2, %v4187_v43 }
 0x22b   :  { %3285 = vmatpush1.bf16.msra.mxu0 %v3975_v47  ;;  %v1342_v47 = vrot.slane %v4248_v19, %v1341_v45 }
 0x22c   :  { %3286 = vmatprep.subr.bf16.mxu0 %v3980_v50  ;;  %v1322_v54 = vrot.slane %v4248_v19, %v1321_v52 }
 0x22d   :  { %2935 = vmatpush2.bf16.msra.mxu1 %v3730_v55  ;;  %v1326_v55 = vrot.slane %v4248_v19, %v1325_v53 }
 0x22e   :  { %2936 = vmatprep.subr.bf16.mxu1 %v3723_v56 }
 0x22f   :  { %3287 = vmatpush1.bf16.msra.mxu0 %v3978_v51 }
 0x231   :  { %2937 = vmatpush2.bf16.msra.mxu1 %v3722_v59  ;;  %v3983_v59 = vld [vmem:[#allocation11 + $0x44] ss:$8 sps:$4 sm:$0xff]  }
 0x232   :  { %2938 = vmatprep.subr.bf16.mxu1 %v3715_v60  ;;  %3288 = vmatprep.subr.bf16.mxu0 %v3983_v59 }
 0x233   :  { %3289 = vmatpush1.bf16.msra.mxu0 %v3981_v62 }
 0x234   :  { %3290 = vmatprep.subr.bf16.mxu0 %v3986_v3 }
 0x235   :  { %2939 = vmatpush2.bf16.msra.mxu1 %v3714_v63 }
 0x236   :  { %2940 = vmatprep.subr.bf16.mxu1 %v3707_v36 }
 0x239   :  { %2941 = vmatpush2.bf16.msra.mxu1 %v3706_v0 }
 0x23a   :  { %2942 = vmatprep.subr.bf16.mxu1 %v3699_v1 }
 0x23d   :  { %2943 = vmatpush2.bf16.msra.mxu1 %v3698_v6 }
 0x23e   :  { %2944 = vmatprep.subr.bf16.mxu1 %v3691_v7  ;;  %v3984_v7 = vld [vmem:[#allocation11 + $0x30] ss:$8 sps:$4 sm:$0xff]  }
 0x23f   :  { %3291 = vmatpush1.bf16.msra.mxu0 %v3984_v7 }
 0x240   :  { %3292 = vmatprep.subr.bf16.mxu0 %v3989_v12 }
 0x241   :  { %2945 = vmatpush2.bf16.msra.mxu1 %v3690_v10 }
 0x242   :  { %2946 = vmatprep.subr.bf16.mxu1 %v3683_v11 }
 0x245   :  { %2947 = vmatpush2.bf16.msra.mxu1 %v3682_v14  ;;  %v3987_v14 = vld [vmem:[#allocation11 + $0x20] ss:$8 sps:$4 sm:$0xff]  }
 0x246   :  { %2948 = vmatprep.subr.bf16.mxu1 %v3675_v15  ;;  %3293 = vmatpush1.bf16.msra.mxu0 %v3987_v14  ;;  %v3990_v15 = vld [vmem:[#allocation11 + $0x10] ss:$8 sps:$4 sm:$0xff]  }
 0x247   :  { %3294 = vmatprep.subr.bf16.mxu0 %v3992_v18 }
 0x249   :  { %2949 = vmatpush2.bf16.msra.mxu1 %v3674_v21  ;;  %v4137_v21 = vmov 0  }
 0x24a   :  { %3314 = vmatprep.mubr.bf16.mxu0 %v4137_v21  ;;  %3295 = vmatpush1.bf16.msra.mxu0 %v3990_v15 }
 0x24b   :  { %3296 = vmatprep.subr.bf16.mxu0 %v3995_v20 }
 0x24c   :  { %v2747_v27 = vpop.f32.mrf.mxu0  ;;  %2951 = vmatmul.mubr.bf16.vlgmr.msra.gmra.mxu1 %v4226_v4  ;;  %v2706_v30 = vpop.f32.mrf.mxu1 }
 0x24d   :  { %v2707_v33 = vadd.f32 %v2706_v30, %v2666_v26  ;;  %v2748_v56 = vadd.f32 %v2747_v27, %v1322_v54 }
 0x24e   :  { %v2749_v34 = vpop.f32.mrf.mxu0  ;;  %v2708_v35 = vpop.f32.mrf.mxu1  ;;  %3297 = vmatpush1.bf16.msra.mxu0 %v3993_v29 }
 0x24f   :  { %v2959_v2 = vmax.f32 %v2707_v33, 0.0  ;;  %v2709_v37 = vadd.f32 %v2708_v35, %v2668_v32  ;;  %v2750_v60 = vadd.f32 %v2749_v34, %v1326_v55 }
 0x250   :  { %v2751_v48 = vpop.f32.mrf.mxu0  ;;  %v2710_v38 = vpop.f32.mrf.mxu1 }
 0x251   :  { %v2974_v39 = vrot.slane %v2959_v2, %v4257_v49  ;;  %v2960_v17 = vmax.f32 %v2709_v37, 0.0 }
 0x252   :  { %v2752_v28 = vpop.f32.mrf.mxu0  ;;  %v2711_v41 = vpop.f32.mrf.mxu1 }
 0x253   :  { %v2975_v42 = vcombine.high %v2974_v39, %v2974_v39  ;;  %3732 = vst.sshfl [vmem:[#allocation2] sm:$0x1 pattern:$0x73625140] %v2974_v39  ;;  %v3001_v4 = vrot.slane %v2960_v17, %v4257_v49 }
 0x255   :  { %3733 = vst.sshfl [vmem:[#allocation2 + $0x8] sm:$0x1 pattern:$0x73625140] %v2975_v42  ;;  %v3002_v31 = vcombine.high %v3001_v4, %v3001_v4 }
 0x256   :  { %3734 = vst.sshfl [vmem:[#allocation2 + $0x1] sm:$0x1 pattern:$0x73625140] %v3001_v4 }
 0x257   :  { %3735 = vst.sshfl [vmem:[#allocation2 + $0x9] sm:$0x1 pattern:$0x73625140] %v3002_v31 }
 0x28c   :  { %v2788_v57 = vpop.f32.mrf.mxu1  ;;  %v2829_v58 = vpop.f32.mrf.mxu0 }
 0x28d   :  { %v2789_v61 = vadd.f32 %v2788_v57, %v2748_v56  ;;  %v2830_v26 = vadd.f32 %v2829_v58, %v1330_v24 }
 0x28e   :  { %v2790_v63 = vpop.f32.mrf.mxu1  ;;  %v2831_v36 = vpop.f32.mrf.mxu0 }
 0x28f   :  { %v2961_v16 = vmax.f32 %v2789_v61, 0.0  ;;  %v2791_v40 = vadd.f32 %v2790_v63, %v2750_v60  ;;  %v2832_v30 = vadd.f32 %v2831_v36, %v1334_v25 }
 0x290   :  { %v2792_v0 = vpop.f32.mrf.mxu1  ;;  %v2833_v1 = vpop.f32.mrf.mxu0 }
 0x291   :  { %v3028_v5 = vrot.slane %v2961_v16, %v4257_v49  ;;  %v2962_v6 = vmax.f32 %v2791_v40, 0.0 }
 0x292   :  { %v2793_v8 = vpop.f32.mrf.mxu1  ;;  %v2834_v9 = vpop.f32.mrf.mxu0 }
 0x293   :  { %v3029_v10 = vcombine.high %v3028_v5, %v3028_v5  ;;  %3736 = vst.sshfl [vmem:[#allocation2 + $0x2] sm:$0x1 pattern:$0x73625140] %v3028_v5  ;;  %v3055_v11 = vrot.slane %v2962_v6, %v4257_v49 }
 0x295   :  { %3737 = vst.sshfl [vmem:[#allocation2 + $0xa] sm:$0x1 pattern:$0x73625140] %v3029_v10  ;;  %v3056_v13 = vcombine.high %v3055_v11, %v3055_v11 }
 0x296   :  { %3738 = vst.sshfl [vmem:[#allocation2 + $0x3] sm:$0x1 pattern:$0x73625140] %v3055_v11 }
 0x297   :  { %3739 = vst.sshfl [vmem:[#allocation2 + $0xb] sm:$0x1 pattern:$0x73625140] %v3056_v13 }
 0x2cc   :  { %v2870_v27 = vpop.f32.mrf.mxu1 }
 0x2cd   :  { %v2871_v32 = vadd.f32 %v2870_v27, %v2830_v26  ;;  %v2911_v33 = vpop.f32.mrf.mxu0 }
 0x2ce   :  { %v2872_v34 = vpop.f32.mrf.mxu1  ;;  %v2912_v50 = vadd.f32 %v2911_v33, %v1338_v46 }
 0x2cf   :  { %v2963_v35 = vmax.f32 %v2871_v32, 0.0  ;;  %v2873_v2 = vadd.f32 %v2872_v34, %v2832_v30  ;;  %v2913_v37 = vpop.f32.mrf.mxu0 }
 0x2d0   :  { %v2874_v48 = vpop.f32.mrf.mxu1  ;;  %v2914_v52 = vadd.f32 %v2913_v37, %v1342_v47 }
 0x2d1   :  { %v3082_v38 = vrot.slane %v2963_v35, %v4257_v49  ;;  %v2964_v39 = vmax.f32 %v2873_v2, 0.0  ;;  %v2915_v17 = vpop.f32.mrf.mxu0 }
 0x2d2   :  { %v2875_v28 = vpop.f32.mrf.mxu1 }
 0x2d3   :  { %v3083_v41 = vcombine.high %v3082_v38, %v3082_v38  ;;  %3740 = vst.sshfl [vmem:[#allocation2 + $0x4] sm:$0x1 pattern:$0x73625140] %v3082_v38  ;;  %v3109_v42 = vrot.slane %v2964_v39, %v4257_v49  ;;  %v2916_v4 = vpop.f32.mrf.mxu0 }
 0x2d5   :  { %3741 = vst.sshfl [vmem:[#allocation2 + $0xc] sm:$0x1 pattern:$0x73625140] %v3083_v41  ;;  %v3110_v31 = vcombine.high %v3109_v42, %v3109_v42 }
 0x2d6   :  { %3742 = vst.sshfl [vmem:[#allocation2 + $0x5] sm:$0x1 pattern:$0x73625140] %v3109_v42 }
 0x2d7   :  { %3743 = vst.sshfl [vmem:[#allocation2 + $0xd] sm:$0x1 pattern:$0x73625140] %v3110_v31 }
 0x30c   :  { %v2952_v51 = vpop.f32.mrf.mxu1 }
 0x30d   :  { %v2953_v53 = vadd.f32 %v2952_v51, %v2912_v50 }
 0x30e   :  { %v2954_v54 = vpop.f32.mrf.mxu1 }
 0x30f   :  { %v2965_v55 = vmax.f32 %v2953_v53, 0.0  ;;  %v2955_v56 = vadd.f32 %v2954_v54, %v2914_v52 }
 0x310   :  { %v2956_v57 = vpop.f32.mrf.mxu1 }
 0x311   :  { %v3136_v58 = vrot.slane %v2965_v55, %v4257_v49  ;;  %v2966_v59 = vmax.f32 %v2955_v56, 0.0 }
 0x312   :  { %v2957_v60 = vpop.f32.mrf.mxu1 }
 0x313   :  { %v3137_v61 = vcombine.high %v3136_v58, %v3136_v58  ;;  %3744 = vst.sshfl [vmem:[#allocation2 + $0x6] sm:$0x1 pattern:$0x73625140] %v3136_v58  ;;  %v3163_v43 = vrot.slane %v2966_v59, %v4257_v49 }
 0x315   :  { %3745 = vst.sshfl [vmem:[#allocation2 + $0xe] sm:$0x1 pattern:$0x73625140] %v3137_v61  ;;  %v3164_v62 = vcombine.high %v3163_v43, %v3163_v43 }
 0x316   :  { %3746 = vst.sshfl [vmem:[#allocation2 + $0x7] sm:$0x1 pattern:$0x73625140] %v3163_v43 }
 0x317   :  { %3747 = vst.sshfl [vmem:[#allocation2 + $0xf] sm:$0x1 pattern:$0x73625140] %v3164_v62 }
 0x31d   :  { %v3183_v19 = vld [vmem:[#allocation2] sm:$0xff] }
 0x31e   :  { %v3184_v63 = vld [vmem:[#allocation2 + $0x8] sm:$0xff] }
 0x31f   :  { %v3185_v36 = vpack.c.bf16 %v3184_v63, %v3183_v19 }
 0x321   :  { %3315 = vmatmul.mubr.bf16.vlgmr.msra.gmra.mxu0 %v3185_v36 }
 0x3e1   :  { %v3316_v16 = vpop.f32.mrf.mxu0 }
 0x3e2   :  { %3325 = vst [vmem:[#allocation12] sm:$0xff] %v3316_v16 }
 0x3e3   :  { %v3318_v40 = vpop.f32.mrf.mxu0 }
 0x3e4   :  { %3326 = vst [vmem:[#allocation12 + $0x8] sm:$0xff] %v3318_v40 }
 0x3e5   :  { %v3320_v0 = vpop.f32.mrf.mxu0 }
 0x3e6   :  { %3327 = vst [vmem:[#allocation12 + $0x10] sm:$0xff] %v3320_v0 }
 0x3e7   :  { %v3322_v1 = vpop.f32.mrf.mxu0 }
 0x3e8   :  { %3328 = vst [vmem:[#allocation12 + $0x18] sm:$0xff] %v3322_v1 }
 0x3e9   :  { %4107 = shalt.err (!%p4104_p1)
}
 0x3ea   :  { %3340 = dma.vmem_to_hbm [thread:$0]  %s3335_s4, 512, %s4290_s5, [#allocation5], %s4125_s21, %s4125_s21, %s4126_s22  }
 0x3eb   :  { %4122 = dma.done.wait [#allocation5], 512  }
 0x3ec   :  { %4123 = vsyncadd [#allocation5], 4294966784 }
 0x3ed   :  { %3344 = vsyncpa [#allocation4], 1 }
 0x3ee   :  { %3345 = vsyncpa [#allocation7], 1 }
 0x3ef   :  { %3346 = vsyncpa [#allocation10], 1 }
 0x3f0   :  { %3347 = vsyncpa [#allocation5], 1 }

</bundles_post_ra>
